<compile_context>
chip_gen: v6e
topology: v6e:2x2x1
jax: 0.10.0
libtpu: 0.0.40
codegen_flags: <defaults>
</compile_context>

<pallas_src>
import numpy as np

import jax
import jax.numpy as jnp
from jax.experimental import pallas as pl
from jax.experimental.pallas import tpu as pltpu

# ----------------------------------------------------------------------------
# static network geometry (28x28 input is required by x.view(-1, 320))
# ----------------------------------------------------------------------------
C1, C2, F1, OUT = 10, 20, 50, 10        # conv1/conv2 channels, fc widths
H_IN = W_IN = 28
P1 = 12                                 # conv1 pooled spatial size
P2 = 4                                  # conv2 pooled spatial size
L1 = W_IN                               # conv1 input-row lane width  (w)
L2 = P1 * C1                            # conv2 input-row lane width  (w*C1 + ci) = 120
K1 = 5 * L1                             # 140  (conv1 banded-matmul contraction)
K2 = 5 * L2                             # 600  (conv2 banded-matmul contraction)
N1 = P1 * C1                            # 120  conv1 matmul lanes  (pw*C1 + co)
N2 = P2 * C2                            # 80   conv2 matmul lanes  (pw2*C2 + co)

USE_BF16 = False                        # flip to run MXU operands in bf16 (f32 accum)
MM_DTYPE = jnp.bfloat16 if USE_BF16 else jnp.float32


# ----------------------------------------------------------------------------
# fused whole-network kernel
# ----------------------------------------------------------------------------
def _make_kernel(tb):
    """tb = samples processed per grid step (static)."""

    def kernel(x_ref, w1_ref, b1_ref, w2_ref, b2_ref,
               fw1_ref, fb1_ref, fw2_ref, fb2_ref,
               c1_ref, c2_ref, f1_ref, out_ref):
        b1 = b1_ref[...]                            # (1, N1)
        b2 = b2_ref[...]                            # (1, N2)
        fb1 = fb1_ref[...]                          # (1, F1)
        fb2 = fb2_ref[...]                          # (1, OUT)
        fw2 = fw2_ref[...]                          # (F1, OUT)

        for s in range(tb):
            x = x_ref[s]                            # (4, 7, 28): x4[p, u, :] = x[4u+p, :]

            # ---- conv1 (5x5) + 2x2 maxpool + bias + ReLU, per pooled-row parity r
            c1_halves = []
            for r in range(2):                      # pooled row ph = 2j + r
                m = None
                for dy in range(2):                 # pool corner (rows)
                    # rows needed: x[4j + (2r+dy+ky)], ky = 0..4  -> static slices
                    xs = jnp.concatenate(
                        [x[(2 * r + dy + ky) % 4,
                           (2 * r + dy + ky) // 4:(2 * r + dy + ky) // 4 + 6, :]
                         for ky in range(5)],
                        axis=1,
                    ).astype(MM_DTYPE)              # (6, 140)
                    for dx in range(2):             # pool corner (cols), folded into B1[dx]
                        y = jnp.dot(xs, w1_ref[dx],
                                    preferred_element_type=jnp.float32)   # (6, 120)
                        m = y if m is None else jnp.maximum(m, y)
                half = jnp.maximum(m + b1, 0.0)     # rows ph=2j+r, lanes pw*C1+co
                c1_ref[s, r] = half
                c1_halves.append(half)

            # ---- conv2 (5x5, 10->20) + Dropout2d(identity) + 2x2 maxpool + bias + ReLU
            m2 = None
            for dy in range(2):
                xs2 = jnp.concatenate(
                    [c1_halves[(dy + ky) % 2]
                     [(dy + ky) // 2:(dy + ky) // 2 + 4, :]
                     for ky in range(5)],
                    axis=1,
                ).astype(MM_DTYPE)                  # (4, 600)
                for dx in range(2):
                    y2 = jnp.dot(xs2, w2_ref[dx],
                                 preferred_element_type=jnp.float32)      # (4, 80)
                    m2 = y2 if m2 is None else jnp.maximum(m2, y2)
            c2b = jnp.maximum(m2 + b2, 0.0)         # c2b[p2, pw2*C2+co] = c2[co, p2, pw2]
            c2_ref[s] = c2b

            # ---- fc1 + ReLU (the NCHW view(-1, 320) permutation is folded into fw1 rows)
            acc = fb1                               # (1, F1)
            for p2 in range(P2):
                acc = acc + jnp.dot(c2b[p2:p2 + 1, :].astype(MM_DTYPE), fw1_ref[p2],
                                    preferred_element_type=jnp.float32)
            f1v = jnp.maximum(acc, 0.0)             # (1, 50)
            f1_ref[s] = f1v

            # TODO(synk): nn.Dropout(p=0.2) / nn.Dropout2d modeled as identity
            # (eval mode); training-mode parity needs pltpu.prng_seed/prng_random_bits.
            out_ref[s] = jnp.maximum(
                jnp.dot(f1v.astype(MM_DTYPE), fw2,
                        preferred_element_type=jnp.float32) + fb2, 0.0)   # (1, 10)

    return kernel


# ----------------------------------------------------------------------------
# wrapper
# ----------------------------------------------------------------------------
def _samples_per_step(n):
    """Largest divisor of n, <= 8, that still leaves >= 2 grid steps (v7x: 2 TCs)."""
    tb = 1
    for t in range(1, min(8, n) + 1):
        if n % t == 0 and n // t >= 2:
            tb = t
    return tb


def net_forward(x, params):
    n = x.shape[0]
    assert x.shape[1:] == (1, H_IN, W_IN), "Net.forward requires 1x28x28 input"

    # mod-4 row split of the raw input (1x bytes): lets the kernel reach every conv
    # row needed for any (pooled-row parity, pool corner, tap) with static slices.
    x4 = x.reshape(n, 7, 4, W_IN).transpose(0, 2, 1, 3)        # (N, 4, 7, 28)

    tb = _samples_per_step(n)
    grid = (n // tb,)

    c1_raw, c2_raw, f1_raw, out_raw = pl.pallas_call(
        _make_kernel(tb),
        out_shape=(
            jax.ShapeDtypeStruct((n, 2, 6, N1), jnp.float32),  # c1: [n, r, j, pw*C1+co]
            jax.ShapeDtypeStruct((n, P2, N2), jnp.float32),    # c2: [n, p2, pw2*C2+co]
            jax.ShapeDtypeStruct((n, 1, F1), jnp.float32),
            jax.ShapeDtypeStruct((n, 1, OUT), jnp.float32),
        ),
        grid=grid,
        in_specs=[
            pl.BlockSpec((tb, 4, 7, W_IN), lambda i: (i, 0, 0, 0)),
            pl.BlockSpec((2, K1, N1), lambda i: (0, 0, 0)),
            pl.BlockSpec((1, N1), lambda i: (0, 0)),
            pl.BlockSpec((2, K2, N2), lambda i: (0, 0, 0)),
            pl.BlockSpec((1, N2), lambda i: (0, 0)),
            pl.BlockSpec((P2, N2, F1), lambda i: (0, 0, 0)),
            pl.BlockSpec((1, F1), lambda i: (0, 0)),
            pl.BlockSpec((F1, OUT), lambda i: (0, 0)),
            pl.BlockSpec((1, OUT), lambda i: (0, 0)),
        ],
        out_specs=(
            pl.BlockSpec((tb, 2, 6, N1), lambda i: (i, 0, 0, 0)),
            pl.BlockSpec((tb, P2, N2), lambda i: (i, 0, 0)),
            pl.BlockSpec((tb, 1, F1), lambda i: (i, 0, 0)),
            pl.BlockSpec((tb, 1, OUT), lambda i: (i, 0, 0)),
        ),
        compiler_params=pltpu.CompilerParams(dimension_semantics=("parallel",)),
    )(x4, params["w1b"], params["b1t"], params["w2b"], params["b2t"],
      params["fw1p"], params["fb1"], params["fw2m"], params["fb2"])

    # exact-size relayouts back to PyTorch's output formats (tiny, no padding)
    c1 = (c1_raw.reshape(n, 2, 6, P1, C1)          # [n, r, j, pw, co]
          .transpose(0, 4, 2, 1, 3)                # [n, co, j, r, pw]
          .reshape(n, C1, P1, P1))                 # ph = 2j + r
    c2 = c2_raw.reshape(n, P2, P2, C2).transpose(0, 3, 1, 2)
    f1 = f1_raw.reshape(n, F1)
    out = out_raw.reshape(n, OUT)
    return c1, c2, f1, out


# ----------------------------------------------------------------------------
# parameter construction (host-side, once)
# ----------------------------------------------------------------------------
def _conv_pool_matrices(w, in_w, pooled_w):
    """Banded matrices B[dx] such that (row-stacked input) @ B[dx] yields the conv
    output at width-pooled columns 2*pw+dx for every conv output row.

    Input-row lane layout:  lane = w_in*Ci + ci
    Stacked-row layout:     row  = ky*(in_w*Ci) + w_in*Ci + ci
    Output lane layout:     lane = pw*Co + co
    """
    co_n, ci_n, kh, kw = w.shape
    lane = in_w * ci_n
    b = np.zeros((2, kh * lane, pooled_w * co_n), np.float32)
    for dx in range(2):
        for ky in range(kh):
            for kx in range(kw):
                for pw in range(pooled_w):
                    w_in = 2 * pw + dx + kx
                    r0 = ky * lane + w_in * ci_n
                    b[dx, r0:r0 + ci_n, pw * co_n:(pw + 1) * co_n] = w[:, :, ky, kx].T
    return b


def pack_params(w1, b1, w2, b2, fw1, fb1, fw2, fb2):
    """PyTorch-layout weights -> fused-kernel matmul layout."""
    w1b = _conv_pool_matrices(w1, W_IN, P1)                    # (2, 140, 120)
    w2b = _conv_pool_matrices(w2, P1, P2)                      # (2, 600, 80)
    b1t = np.tile(b1, P1).reshape(1, N1)                       # lane = pw*C1 + co
    b2t = np.tile(b2, P2).reshape(1, N2)                       # lane = pw2*C2 + co

    # fc1 with PyTorch's NCHW view(-1, 320) flatten folded into the row order:
    # kernel feeds row p2 (c2 output row) with lanes pw2*C2 + co.
    fw1p = np.zeros((P2, N2, F1), np.float32)
    for p2 in range(P2):
        for pw2 in range(P2):
            for co in range(C2):
                fw1p[p2, pw2 * C2 + co, :] = fw1[:, co * (P2 * P2) + p2 * P2 + pw2]

    mats = dict(w1b=w1b, w2b=w2b, fw1p=fw1p, fw2m=np.ascontiguousarray(fw2.T))
    params = {k: jnp.asarray(v, MM_DTYPE) for k, v in mats.items()}
    params.update(
        b1t=jnp.asarray(b1t), b2t=jnp.asarray(b2t),
        fb1=jnp.asarray(fb1.reshape(1, F1), jnp.float32),
        fb2=jnp.asarray(fb2.reshape(1, OUT), jnp.float32),
    )
    return params


def init_params(key):
    """PyTorch-style U(-1/sqrt(fan_in), 1/sqrt(fan_in)) init, then repack."""
    ks = jax.random.split(key, 8)

    def u(k, shape, fan_in):
        bound = 1.0 / np.sqrt(fan_in)
        return np.asarray(jax.random.uniform(k, shape, jnp.float32, -bound, bound))

    w1 = u(ks[0], (C1, 1, 5, 5), 25)          # Conv2d(1, 10, 5)
    b1 = u(ks[1], (C1,), 25)
    w2 = u(ks[2], (C2, C1, 5, 5), 250)        # Conv2d(10, 20, 5)
    b2 = u(ks[3], (C2,), 250)
    fw1 = u(ks[4], (F1, 320), 320)            # Linear(320, 50)
    fb1 = u(ks[5], (F1,), 320)
    fw2 = u(ks[6], (OUT, F1), 50)             # Linear(50, 10)
    fb2 = u(ks[7], (OUT,), 50)
    return pack_params(w1, b1, w2, b2, fw1, fb1, fw2, fb2)


if __name__ == "__main__":
    key = jax.random.PRNGKey(0)
    kx, kp = jax.random.split(key)
    # MNIST-style input: x.view(-1, 320) in Net.forward requires 1x28x28.
    x = jax.random.normal(kx, (2, 1, 28, 28), jnp.float32)
    params = init_params(kp)

    c1, c2, f1, out = jax.jit(net_forward)(x, params)
    jax.block_until_ready((c1, c2, f1, out))

    assert c1.shape == (2, 10, 12, 12)
    assert c2.shape == (2, 20, 4, 4)
    assert f1.shape == (2, 50)
    assert out.shape == (2, 10)
    print("KERNEL_OK")
</pallas_src>

<mosaic_0001>
module attributes {stable_mosaic.version = 11 : i64} {
  func.func @kernel(%arg0: i32, %arg1: memref<1x4x7x28xf32, #tpu.memory_space<vmem>>, %arg2: memref<2x140x120xf32, #tpu.memory_space<vmem>>, %arg3: memref<1x120xf32, #tpu.memory_space<vmem>>, %arg4: memref<2x600x80xf32, #tpu.memory_space<vmem>>, %arg5: memref<1x80xf32, #tpu.memory_space<vmem>>, %arg6: memref<4x80x50xf32, #tpu.memory_space<vmem>>, %arg7: memref<1x50xf32, #tpu.memory_space<vmem>>, %arg8: memref<50x10xf32, #tpu.memory_space<vmem>>, %arg9: memref<1x10xf32, #tpu.memory_space<vmem>>, %arg10: memref<1x2x6x120xf32, #tpu.memory_space<vmem>>, %arg11: memref<1x4x80xf32, #tpu.memory_space<vmem>>, %arg12: memref<1x1x50xf32, #tpu.memory_space<vmem>>, %arg13: memref<1x1x10xf32, #tpu.memory_space<vmem>>) attributes {dimension_semantics = [#tpu.dimension_semantics<parallel>], iteration_bounds = array<i64: 2>, scalar_prefetch = 0 : i64, scratch_operands = 0 : i64, tpu.core_type = #tpu.core_type<tc>, window_params = [{transform_indices = @transform_0, window_bounds = array<i64: 1, 4, 7, 28>}, {pipeline_mode = #tpu.pipeline_mode<synchronous>, transform_indices = @transform_1, window_bounds = array<i64: 2, 140, 120>}, {pipeline_mode = #tpu.pipeline_mode<synchronous>, transform_indices = @transform_2, window_bounds = array<i64: 1, 120>}, {pipeline_mode = #tpu.pipeline_mode<synchronous>, transform_indices = @transform_3, window_bounds = array<i64: 2, 600, 80>}, {pipeline_mode = #tpu.pipeline_mode<synchronous>, transform_indices = @transform_4, window_bounds = array<i64: 1, 80>}, {pipeline_mode = #tpu.pipeline_mode<synchronous>, transform_indices = @transform_5, window_bounds = array<i64: 4, 80, 50>}, {pipeline_mode = #tpu.pipeline_mode<synchronous>, transform_indices = @transform_6, window_bounds = array<i64: 1, 50>}, {pipeline_mode = #tpu.pipeline_mode<synchronous>, transform_indices = @transform_7, window_bounds = array<i64: 50, 10>}, {pipeline_mode = #tpu.pipeline_mode<synchronous>, transform_indices = @transform_8, window_bounds = array<i64: 1, 10>}, {transform_indices = @transform_9, window_bounds = array<i64: 1, 2, 6, 120>}, {transform_indices = @transform_10, window_bounds = array<i64: 1, 4, 80>}, {transform_indices = @transform_11, window_bounds = array<i64: 1, 1, 50>}, {transform_indices = @transform_12, window_bounds = array<i64: 1, 1, 10>}]} {
    %c0 = arith.constant 0 : index
    %c0_0 = arith.constant 0 : index
    %0 = vector.load %arg3[%c0, %c0_0] : memref<1x120xf32, #tpu.memory_space<vmem>>, vector<1x120xf32>
    %c0_1 = arith.constant 0 : index
    %c0_2 = arith.constant 0 : index
    %1 = vector.load %arg5[%c0_1, %c0_2] : memref<1x80xf32, #tpu.memory_space<vmem>>, vector<1x80xf32>
    %c0_3 = arith.constant 0 : index
    %c0_4 = arith.constant 0 : index
    %2 = vector.load %arg7[%c0_3, %c0_4] : memref<1x50xf32, #tpu.memory_space<vmem>>, vector<1x50xf32>
    %c0_5 = arith.constant 0 : index
    %c0_6 = arith.constant 0 : index
    %3 = vector.load %arg9[%c0_5, %c0_6] : memref<1x10xf32, #tpu.memory_space<vmem>>, vector<1x10xf32>
    %c0_7 = arith.constant 0 : index
    %c0_8 = arith.constant 0 : index
    %4 = vector.load %arg8[%c0_7, %c0_8] : memref<50x10xf32, #tpu.memory_space<vmem>>, vector<50x10xf32>
    %c0_9 = arith.constant 0 : index
    %c0_10 = arith.constant 0 : index
    %c0_11 = arith.constant 0 : index
    %c0_12 = arith.constant 0 : index
    %5 = vector.load %arg1[%c0_9, %c0_10, %c0_11, %c0_12] : memref<1x4x7x28xf32, #tpu.memory_space<vmem>>, vector<1x4x7x28xf32>
    %6 = vector.shape_cast %5 : vector<1x4x7x28xf32> to vector<4x7x28xf32>
    %7 = vector.extract_strided_slice %6 {offsets = [0, 0, 0], sizes = [1, 6, 28], strides = [1, 1, 1]} : vector<4x7x28xf32> to vector<1x6x28xf32>
    %8 = vector.shape_cast %7 : vector<1x6x28xf32> to vector<6x28xf32>
    %9 = vector.extract_strided_slice %6 {offsets = [1, 0, 0], sizes = [1, 6, 28], strides = [1, 1, 1]} : vector<4x7x28xf32> to vector<1x6x28xf32>
    %10 = vector.shape_cast %9 : vector<1x6x28xf32> to vector<6x28xf32>
    %11 = vector.extract_strided_slice %6 {offsets = [2, 0, 0], sizes = [1, 6, 28], strides = [1, 1, 1]} : vector<4x7x28xf32> to vector<1x6x28xf32>
    %12 = vector.shape_cast %11 : vector<1x6x28xf32> to vector<6x28xf32>
    %13 = vector.extract_strided_slice %6 {offsets = [3, 0, 0], sizes = [1, 6, 28], strides = [1, 1, 1]} : vector<4x7x28xf32> to vector<1x6x28xf32>
    %14 = vector.shape_cast %13 : vector<1x6x28xf32> to vector<6x28xf32>
    %15 = vector.extract_strided_slice %6 {offsets = [0, 1, 0], sizes = [1, 6, 28], strides = [1, 1, 1]} : vector<4x7x28xf32> to vector<1x6x28xf32>
    %16 = vector.shape_cast %15 : vector<1x6x28xf32> to vector<6x28xf32>
    %17 = tpu.concatenate %8, %10, %12, %14, %16 in 1 : vector<6x28xf32>, vector<6x28xf32>, vector<6x28xf32>, vector<6x28xf32>, vector<6x28xf32> -> vector<6x140xf32>
    %c0_13 = arith.constant 0 : index
    %c0_14 = arith.constant 0 : index
    %c0_15 = arith.constant 0 : index
    %18 = vector.load %arg2[%c0_13, %c0_14, %c0_15] : memref<2x140x120xf32, #tpu.memory_space<vmem>>, vector<1x140x120xf32>
    %19 = vector.shape_cast %18 : vector<1x140x120xf32> to vector<140x120xf32>
    %cst = arith.constant dense<0.000000e+00> : vector<6x120xf32>
    %20 = tpu.matmul %17, %19, %cst {dimension_numbers = #tpu.dot_dimension_numbers<[1], [0], [0], [1], [0, 0, 1, 1], [], []>} : vector<6x140xf32>, vector<140x120xf32>, vector<6x120xf32> -> vector<6x120xf32>
    %c1 = arith.constant 1 : index
    %c0_16 = arith.constant 0 : index
    %c0_17 = arith.constant 0 : index
    %21 = vector.load %arg2[%c1, %c0_16, %c0_17] : memref<2x140x120xf32, #tpu.memory_space<vmem>>, vector<1x140x120xf32>
    %22 = vector.shape_cast %21 : vector<1x140x120xf32> to vector<140x120xf32>
    %cst_18 = arith.constant dense<0.000000e+00> : vector<6x120xf32>
    %23 = tpu.matmul %17, %22, %cst_18 {dimension_numbers = #tpu.dot_dimension_numbers<[1], [0], [0], [1], [0, 0, 1, 1], [], []>} : vector<6x140xf32>, vector<140x120xf32>, vector<6x120xf32> -> vector<6x120xf32>
    %24 = arith.maximumf %20, %23 : vector<6x120xf32>
    %25 = vector.extract_strided_slice %6 {offsets = [1, 0, 0], sizes = [1, 6, 28], strides = [1, 1, 1]} : vector<4x7x28xf32> to vector<1x6x28xf32>
    %26 = vector.shape_cast %25 : vector<1x6x28xf32> to vector<6x28xf32>
    %27 = vector.extract_strided_slice %6 {offsets = [2, 0, 0], sizes = [1, 6, 28], strides = [1, 1, 1]} : vector<4x7x28xf32> to vector<1x6x28xf32>
    %28 = vector.shape_cast %27 : vector<1x6x28xf32> to vector<6x28xf32>
    %29 = vector.extract_strided_slice %6 {offsets = [3, 0, 0], sizes = [1, 6, 28], strides = [1, 1, 1]} : vector<4x7x28xf32> to vector<1x6x28xf32>
    %30 = vector.shape_cast %29 : vector<1x6x28xf32> to vector<6x28xf32>
    %31 = vector.extract_strided_slice %6 {offsets = [0, 1, 0], sizes = [1, 6, 28], strides = [1, 1, 1]} : vector<4x7x28xf32> to vector<1x6x28xf32>
    %32 = vector.shape_cast %31 : vector<1x6x28xf32> to vector<6x28xf32>
    %33 = vector.extract_strided_slice %6 {offsets = [1, 1, 0], sizes = [1, 6, 28], strides = [1, 1, 1]} : vector<4x7x28xf32> to vector<1x6x28xf32>
    %34 = vector.shape_cast %33 : vector<1x6x28xf32> to vector<6x28xf32>
    %35 = tpu.concatenate %26, %28, %30, %32, %34 in 1 : vector<6x28xf32>, vector<6x28xf32>, vector<6x28xf32>, vector<6x28xf32>, vector<6x28xf32> -> vector<6x140xf32>
    %c0_19 = arith.constant 0 : index
    %c0_20 = arith.constant 0 : index
    %c0_21 = arith.constant 0 : index
    %36 = vector.load %arg2[%c0_19, %c0_20, %c0_21] : memref<2x140x120xf32, #tpu.memory_space<vmem>>, vector<1x140x120xf32>
    %37 = vector.shape_cast %36 : vector<1x140x120xf32> to vector<140x120xf32>
    %cst_22 = arith.constant dense<0.000000e+00> : vector<6x120xf32>
    %38 = tpu.matmul %35, %37, %cst_22 {dimension_numbers = #tpu.dot_dimension_numbers<[1], [0], [0], [1], [0, 0, 1, 1], [], []>} : vector<6x140xf32>, vector<140x120xf32>, vector<6x120xf32> -> vector<6x120xf32>
    %39 = arith.maximumf %24, %38 : vector<6x120xf32>
    %c1_23 = arith.constant 1 : index
    %c0_24 = arith.constant 0 : index
    %c0_25 = arith.constant 0 : index
    %40 = vector.load %arg2[%c1_23, %c0_24, %c0_25] : memref<2x140x120xf32, #tpu.memory_space<vmem>>, vector<1x140x120xf32>
    %41 = vector.shape_cast %40 : vector<1x140x120xf32> to vector<140x120xf32>
    %cst_26 = arith.constant dense<0.000000e+00> : vector<6x120xf32>
    %42 = tpu.matmul %35, %41, %cst_26 {dimension_numbers = #tpu.dot_dimension_numbers<[1], [0], [0], [1], [0, 0, 1, 1], [], []>} : vector<6x140xf32>, vector<140x120xf32>, vector<6x120xf32> -> vector<6x120xf32>
    %43 = arith.maximumf %39, %42 : vector<6x120xf32>
    %44 = vector.broadcast %0 : vector<1x120xf32> to vector<6x120xf32>
    %45 = arith.addf %43, %44 : vector<6x120xf32>
    %cst_27 = arith.constant 0.000000e+00 : f32
    %46 = vector.broadcast %cst_27 : f32 to vector<6x120xf32>
    %47 = arith.maximumf %45, %46 : vector<6x120xf32>
    %c0_28 = arith.constant 0 : index
    %c0_29 = arith.constant 0 : index
    %c0_30 = arith.constant 0 : index
    %c0_31 = arith.constant 0 : index
    %48 = vector.load %arg10[%c0_28, %c0_29, %c0_30, %c0_31] : memref<1x2x6x120xf32, #tpu.memory_space<vmem>>, vector<1x1x6x120xf32>
    %49 = vector.shape_cast %48 : vector<1x1x6x120xf32> to vector<6x120xf32>
    %50 = vector.shape_cast %47 : vector<6x120xf32> to vector<1x1x6x120xf32>
    tpu.vector_store %arg10[%c0_28, %c0_29, %c0_30, %c0_31], %50 {strides = array<i32>} : memref<1x2x6x120xf32, #tpu.memory_space<vmem>>, vector<1x1x6x120xf32>,
    %51 = vector.extract_strided_slice %6 {offsets = [2, 0, 0], sizes = [1, 6, 28], strides = [1, 1, 1]} : vector<4x7x28xf32> to vector<1x6x28xf32>
    %52 = vector.shape_cast %51 : vector<1x6x28xf32> to vector<6x28xf32>
    %53 = vector.extract_strided_slice %6 {offsets = [3, 0, 0], sizes = [1, 6, 28], strides = [1, 1, 1]} : vector<4x7x28xf32> to vector<1x6x28xf32>
    %54 = vector.shape_cast %53 : vector<1x6x28xf32> to vector<6x28xf32>
    %55 = vector.extract_strided_slice %6 {offsets = [0, 1, 0], sizes = [1, 6, 28], strides = [1, 1, 1]} : vector<4x7x28xf32> to vector<1x6x28xf32>
    %56 = vector.shape_cast %55 : vector<1x6x28xf32> to vector<6x28xf32>
    %57 = vector.extract_strided_slice %6 {offsets = [1, 1, 0], sizes = [1, 6, 28], strides = [1, 1, 1]} : vector<4x7x28xf32> to vector<1x6x28xf32>
    %58 = vector.shape_cast %57 : vector<1x6x28xf32> to vector<6x28xf32>
    %59 = vector.extract_strided_slice %6 {offsets = [2, 1, 0], sizes = [1, 6, 28], strides = [1, 1, 1]} : vector<4x7x28xf32> to vector<1x6x28xf32>
    %60 = vector.shape_cast %59 : vector<1x6x28xf32> to vector<6x28xf32>
    %61 = tpu.concatenate %52, %54, %56, %58, %60 in 1 : vector<6x28xf32>, vector<6x28xf32>, vector<6x28xf32>, vector<6x28xf32>, vector<6x28xf32> -> vector<6x140xf32>
    %c0_32 = arith.constant 0 : index
    %c0_33 = arith.constant 0 : index
    %c0_34 = arith.constant 0 : index
    %62 = vector.load %arg2[%c0_32, %c0_33, %c0_34] : memref<2x140x120xf32, #tpu.memory_space<vmem>>, vector<1x140x120xf32>
    %63 = vector.shape_cast %62 : vector<1x140x120xf32> to vector<140x120xf32>
    %cst_35 = arith.constant dense<0.000000e+00> : vector<6x120xf32>
    %64 = tpu.matmul %61, %63, %cst_35 {dimension_numbers = #tpu.dot_dimension_numbers<[1], [0], [0], [1], [0, 0, 1, 1], [], []>} : vector<6x140xf32>, vector<140x120xf32>, vector<6x120xf32> -> vector<6x120xf32>
    %c1_36 = arith.constant 1 : index
    %c0_37 = arith.constant 0 : index
    %c0_38 = arith.constant 0 : index
    %65 = vector.load %arg2[%c1_36, %c0_37, %c0_38] : memref<2x140x120xf32, #tpu.memory_space<vmem>>, vector<1x140x120xf32>
    %66 = vector.shape_cast %65 : vector<1x140x120xf32> to vector<140x120xf32>
    %cst_39 = arith.constant dense<0.000000e+00> : vector<6x120xf32>
    %67 = tpu.matmul %61, %66, %cst_39 {dimension_numbers = #tpu.dot_dimension_numbers<[1], [0], [0], [1], [0, 0, 1, 1], [], []>} : vector<6x140xf32>, vector<140x120xf32>, vector<6x120xf32> -> vector<6x120xf32>
    %68 = arith.maximumf %64, %67 : vector<6x120xf32>
    %69 = vector.extract_strided_slice %6 {offsets = [3, 0, 0], sizes = [1, 6, 28], strides = [1, 1, 1]} : vector<4x7x28xf32> to vector<1x6x28xf32>
    %70 = vector.shape_cast %69 : vector<1x6x28xf32> to vector<6x28xf32>
    %71 = vector.extract_strided_slice %6 {offsets = [0, 1, 0], sizes = [1, 6, 28], strides = [1, 1, 1]} : vector<4x7x28xf32> to vector<1x6x28xf32>
    %72 = vector.shape_cast %71 : vector<1x6x28xf32> to vector<6x28xf32>
    %73 = vector.extract_strided_slice %6 {offsets = [1, 1, 0], sizes = [1, 6, 28], strides = [1, 1, 1]} : vector<4x7x28xf32> to vector<1x6x28xf32>
    %74 = vector.shape_cast %73 : vector<1x6x28xf32> to vector<6x28xf32>
    %75 = vector.extract_strided_slice %6 {offsets = [2, 1, 0], sizes = [1, 6, 28], strides = [1, 1, 1]} : vector<4x7x28xf32> to vector<1x6x28xf32>
    %76 = vector.shape_cast %75 : vector<1x6x28xf32> to vector<6x28xf32>
    %77 = vector.extract_strided_slice %6 {offsets = [3, 1, 0], sizes = [1, 6, 28], strides = [1, 1, 1]} : vector<4x7x28xf32> to vector<1x6x28xf32>
    %78 = vector.shape_cast %77 : vector<1x6x28xf32> to vector<6x28xf32>
    %79 = tpu.concatenate %70, %72, %74, %76, %78 in 1 : vector<6x28xf32>, vector<6x28xf32>, vector<6x28xf32>, vector<6x28xf32>, vector<6x28xf32> -> vector<6x140xf32>
    %c0_40 = arith.constant 0 : index
    %c0_41 = arith.constant 0 : index
    %c0_42 = arith.constant 0 : index
    %80 = vector.load %arg2[%c0_40, %c0_41, %c0_42] : memref<2x140x120xf32, #tpu.memory_space<vmem>>, vector<1x140x120xf32>
    %81 = vector.shape_cast %80 : vector<1x140x120xf32> to vector<140x120xf32>
    %cst_43 = arith.constant dense<0.000000e+00> : vector<6x120xf32>
    %82 = tpu.matmul %79, %81, %cst_43 {dimension_numbers = #tpu.dot_dimension_numbers<[1], [0], [0], [1], [0, 0, 1, 1], [], []>} : vector<6x140xf32>, vector<140x120xf32>, vector<6x120xf32> -> vector<6x120xf32>
    %83 = arith.maximumf %68, %82 : vector<6x120xf32>
    %c1_44 = arith.constant 1 : index
    %c0_45 = arith.constant 0 : index
    %c0_46 = arith.constant 0 : index
    %84 = vector.load %arg2[%c1_44, %c0_45, %c0_46] : memref<2x140x120xf32, #tpu.memory_space<vmem>>, vector<1x140x120xf32>
    %85 = vector.shape_cast %84 : vector<1x140x120xf32> to vector<140x120xf32>
    %cst_47 = arith.constant dense<0.000000e+00> : vector<6x120xf32>
    %86 = tpu.matmul %79, %85, %cst_47 {dimension_numbers = #tpu.dot_dimension_numbers<[1], [0], [0], [1], [0, 0, 1, 1], [], []>} : vector<6x140xf32>, vector<140x120xf32>, vector<6x120xf32> -> vector<6x120xf32>
    %87 = arith.maximumf %83, %86 : vector<6x120xf32>
    %88 = vector.broadcast %0 : vector<1x120xf32> to vector<6x120xf32>
    %89 = arith.addf %87, %88 : vector<6x120xf32>
    %cst_48 = arith.constant 0.000000e+00 : f32
    %90 = vector.broadcast %cst_48 : f32 to vector<6x120xf32>
    %91 = arith.maximumf %89, %90 : vector<6x120xf32>
    %c0_49 = arith.constant 0 : index
    %c1_50 = arith.constant 1 : index
    %c0_51 = arith.constant 0 : index
    %c0_52 = arith.constant 0 : index
    %92 = vector.load %arg10[%c0_49, %c1_50, %c0_51, %c0_52] : memref<1x2x6x120xf32, #tpu.memory_space<vmem>>, vector<1x1x6x120xf32>
    %93 = vector.shape_cast %92 : vector<1x1x6x120xf32> to vector<6x120xf32>
    %94 = vector.shape_cast %91 : vector<6x120xf32> to vector<1x1x6x120xf32>
    tpu.vector_store %arg10[%c0_49, %c1_50, %c0_51, %c0_52], %94 {strides = array<i32>} : memref<1x2x6x120xf32, #tpu.memory_space<vmem>>, vector<1x1x6x120xf32>,
    %95 = vector.extract_strided_slice %47 {offsets = [0, 0], sizes = [4, 120], strides = [1, 1]} : vector<6x120xf32> to vector<4x120xf32>
    %96 = vector.extract_strided_slice %91 {offsets = [0, 0], sizes = [4, 120], strides = [1, 1]} : vector<6x120xf32> to vector<4x120xf32>
    %97 = vector.extract_strided_slice %47 {offsets = [1, 0], sizes = [4, 120], strides = [1, 1]} : vector<6x120xf32> to vector<4x120xf32>
    %98 = vector.extract_strided_slice %91 {offsets = [1, 0], sizes = [4, 120], strides = [1, 1]} : vector<6x120xf32> to vector<4x120xf32>
    %99 = vector.extract_strided_slice %47 {offsets = [2, 0], sizes = [4, 120], strides = [1, 1]} : vector<6x120xf32> to vector<4x120xf32>
    %100 = tpu.concatenate %95, %96, %97, %98, %99 in 1 : vector<4x120xf32>, vector<4x120xf32>, vector<4x120xf32>, vector<4x120xf32>, vector<4x120xf32> -> vector<4x600xf32>
    %c0_53 = arith.constant 0 : index
    %c0_54 = arith.constant 0 : index
    %c0_55 = arith.constant 0 : index
    %101 = vector.load %arg4[%c0_53, %c0_54, %c0_55] : memref<2x600x80xf32, #tpu.memory_space<vmem>>, vector<1x600x80xf32>
    %102 = vector.shape_cast %101 : vector<1x600x80xf32> to vector<600x80xf32>
    %cst_56 = arith.constant dense<0.000000e+00> : vector<4x80xf32>
    %103 = tpu.matmul %100, %102, %cst_56 {dimension_numbers = #tpu.dot_dimension_numbers<[1], [0], [0], [1], [0, 0, 1, 1], [], []>} : vector<4x600xf32>, vector<600x80xf32>, vector<4x80xf32> -> vector<4x80xf32>
    %c1_57 = arith.constant 1 : index
    %c0_58 = arith.constant 0 : index
    %c0_59 = arith.constant 0 : index
    %104 = vector.load %arg4[%c1_57, %c0_58, %c0_59] : memref<2x600x80xf32, #tpu.memory_space<vmem>>, vector<1x600x80xf32>
    %105 = vector.shape_cast %104 : vector<1x600x80xf32> to vector<600x80xf32>
    %cst_60 = arith.constant dense<0.000000e+00> : vector<4x80xf32>
    %106 = tpu.matmul %100, %105, %cst_60 {dimension_numbers = #tpu.dot_dimension_numbers<[1], [0], [0], [1], [0, 0, 1, 1], [], []>} : vector<4x600xf32>, vector<600x80xf32>, vector<4x80xf32> -> vector<4x80xf32>
    %107 = arith.maximumf %103, %106 : vector<4x80xf32>
    %108 = vector.extract_strided_slice %91 {offsets = [0, 0], sizes = [4, 120], strides = [1, 1]} : vector<6x120xf32> to vector<4x120xf32>
    %109 = vector.extract_strided_slice %47 {offsets = [1, 0], sizes = [4, 120], strides = [1, 1]} : vector<6x120xf32> to vector<4x120xf32>
    %110 = vector.extract_strided_slice %91 {offsets = [1, 0], sizes = [4, 120], strides = [1, 1]} : vector<6x120xf32> to vector<4x120xf32>
    %111 = vector.extract_strided_slice %47 {offsets = [2, 0], sizes = [4, 120], strides = [1, 1]} : vector<6x120xf32> to vector<4x120xf32>
    %112 = vector.extract_strided_slice %91 {offsets = [2, 0], sizes = [4, 120], strides = [1, 1]} : vector<6x120xf32> to vector<4x120xf32>
    %113 = tpu.concatenate %108, %109, %110, %111, %112 in 1 : vector<4x120xf32>, vector<4x120xf32>, vector<4x120xf32>, vector<4x120xf32>, vector<4x120xf32> -> vector<4x600xf32>
    %c0_61 = arith.constant 0 : index
    %c0_62 = arith.constant 0 : index
    %c0_63 = arith.constant 0 : index
    %114 = vector.load %arg4[%c0_61, %c0_62, %c0_63] : memref<2x600x80xf32, #tpu.memory_space<vmem>>, vector<1x600x80xf32>
    %115 = vector.shape_cast %114 : vector<1x600x80xf32> to vector<600x80xf32>
    %cst_64 = arith.constant dense<0.000000e+00> : vector<4x80xf32>
    %116 = tpu.matmul %113, %115, %cst_64 {dimension_numbers = #tpu.dot_dimension_numbers<[1], [0], [0], [1], [0, 0, 1, 1], [], []>} : vector<4x600xf32>, vector<600x80xf32>, vector<4x80xf32> -> vector<4x80xf32>
    %117 = arith.maximumf %107, %116 : vector<4x80xf32>
    %c1_65 = arith.constant 1 : index
    %c0_66 = arith.constant 0 : index
    %c0_67 = arith.constant 0 : index
    %118 = vector.load %arg4[%c1_65, %c0_66, %c0_67] : memref<2x600x80xf32, #tpu.memory_space<vmem>>, vector<1x600x80xf32>
    %119 = vector.shape_cast %118 : vector<1x600x80xf32> to vector<600x80xf32>
    %cst_68 = arith.constant dense<0.000000e+00> : vector<4x80xf32>
    %120 = tpu.matmul %113, %119, %cst_68 {dimension_numbers = #tpu.dot_dimension_numbers<[1], [0], [0], [1], [0, 0, 1, 1], [], []>} : vector<4x600xf32>, vector<600x80xf32>, vector<4x80xf32> -> vector<4x80xf32>
    %121 = arith.maximumf %117, %120 : vector<4x80xf32>
    %122 = vector.broadcast %1 : vector<1x80xf32> to vector<4x80xf32>
    %123 = arith.addf %121, %122 : vector<4x80xf32>
    %cst_69 = arith.constant 0.000000e+00 : f32
    %124 = vector.broadcast %cst_69 : f32 to vector<4x80xf32>
    %125 = arith.maximumf %123, %124 : vector<4x80xf32>
    %c0_70 = arith.constant 0 : index
    %c0_71 = arith.constant 0 : index
    %c0_72 = arith.constant 0 : index
    %126 = vector.load %arg11[%c0_70, %c0_71, %c0_72] : memref<1x4x80xf32, #tpu.memory_space<vmem>>, vector<1x4x80xf32>
    %127 = vector.shape_cast %126 : vector<1x4x80xf32> to vector<4x80xf32>
    %128 = vector.shape_cast %125 : vector<4x80xf32> to vector<1x4x80xf32>
    tpu.vector_store %arg11[%c0_70, %c0_71, %c0_72], %128 {strides = array<i32>} : memref<1x4x80xf32, #tpu.memory_space<vmem>>, vector<1x4x80xf32>,
    %129 = vector.extract_strided_slice %125 {offsets = [0, 0], sizes = [1, 80], strides = [1, 1]} : vector<4x80xf32> to vector<1x80xf32>
    %c0_73 = arith.constant 0 : index
    %c0_74 = arith.constant 0 : index
    %c0_75 = arith.constant 0 : index
    %130 = vector.load %arg6[%c0_73, %c0_74, %c0_75] : memref<4x80x50xf32, #tpu.memory_space<vmem>>, vector<1x80x50xf32>
    %131 = vector.shape_cast %130 : vector<1x80x50xf32> to vector<80x50xf32>
    %cst_76 = arith.constant dense<0.000000e+00> : vector<1x50xf32>
    %132 = tpu.matmul %129, %131, %cst_76 {dimension_numbers = #tpu.dot_dimension_numbers<[1], [0], [0], [1], [0, 0, 1, 1], [], []>} : vector<1x80xf32>, vector<80x50xf32>, vector<1x50xf32> -> vector<1x50xf32>
    %133 = arith.addf %2, %132 : vector<1x50xf32>
    %134 = vector.extract_strided_slice %125 {offsets = [1, 0], sizes = [1, 80], strides = [1, 1]} : vector<4x80xf32> to vector<1x80xf32>
    %c1_77 = arith.constant 1 : index
    %c0_78 = arith.constant 0 : index
    %c0_79 = arith.constant 0 : index
    %135 = vector.load %arg6[%c1_77, %c0_78, %c0_79] : memref<4x80x50xf32, #tpu.memory_space<vmem>>, vector<1x80x50xf32>
    %136 = vector.shape_cast %135 : vector<1x80x50xf32> to vector<80x50xf32>
    %cst_80 = arith.constant dense<0.000000e+00> : vector<1x50xf32>
    %137 = tpu.matmul %134, %136, %cst_80 {dimension_numbers = #tpu.dot_dimension_numbers<[1], [0], [0], [1], [0, 0, 1, 1], [], []>} : vector<1x80xf32>, vector<80x50xf32>, vector<1x50xf32> -> vector<1x50xf32>
    %138 = arith.addf %133, %137 : vector<1x50xf32>
    %139 = vector.extract_strided_slice %125 {offsets = [2, 0], sizes = [1, 80], strides = [1, 1]} : vector<4x80xf32> to vector<1x80xf32>
    %c2 = arith.constant 2 : index
    %c0_81 = arith.constant 0 : index
    %c0_82 = arith.constant 0 : index
    %140 = vector.load %arg6[%c2, %c0_81, %c0_82] : memref<4x80x50xf32, #tpu.memory_space<vmem>>, vector<1x80x50xf32>
    %141 = vector.shape_cast %140 : vector<1x80x50xf32> to vector<80x50xf32>
    %cst_83 = arith.constant dense<0.000000e+00> : vector<1x50xf32>
    %142 = tpu.matmul %139, %141, %cst_83 {dimension_numbers = #tpu.dot_dimension_numbers<[1], [0], [0], [1], [0, 0, 1, 1], [], []>} : vector<1x80xf32>, vector<80x50xf32>, vector<1x50xf32> -> vector<1x50xf32>
    %143 = arith.addf %138, %142 : vector<1x50xf32>
    %144 = vector.extract_strided_slice %125 {offsets = [3, 0], sizes = [1, 80], strides = [1, 1]} : vector<4x80xf32> to vector<1x80xf32>
    %c3 = arith.constant 3 : index
    %c0_84 = arith.constant 0 : index
    %c0_85 = arith.constant 0 : index
    %145 = vector.load %arg6[%c3, %c0_84, %c0_85] : memref<4x80x50xf32, #tpu.memory_space<vmem>>, vector<1x80x50xf32>
    %146 = vector.shape_cast %145 : vector<1x80x50xf32> to vector<80x50xf32>
    %cst_86 = arith.constant dense<0.000000e+00> : vector<1x50xf32>
    %147 = tpu.matmul %144, %146, %cst_86 {dimension_numbers = #tpu.dot_dimension_numbers<[1], [0], [0], [1], [0, 0, 1, 1], [], []>} : vector<1x80xf32>, vector<80x50xf32>, vector<1x50xf32> -> vector<1x50xf32>
    %148 = arith.addf %143, %147 : vector<1x50xf32>
    %cst_87 = arith.constant 0.000000e+00 : f32
    %149 = vector.broadcast %cst_87 : f32 to vector<1x50xf32>
    %150 = arith.maximumf %148, %149 : vector<1x50xf32>
    %c0_88 = arith.constant 0 : index
    %c0_89 = arith.constant 0 : index
    %c0_90 = arith.constant 0 : index
    %151 = vector.load %arg12[%c0_88, %c0_89, %c0_90] : memref<1x1x50xf32, #tpu.memory_space<vmem>>, vector<1x1x50xf32>
    %152 = vector.shape_cast %151 : vector<1x1x50xf32> to vector<1x50xf32>
    %153 = vector.shape_cast %150 : vector<1x50xf32> to vector<1x1x50xf32>
    tpu.vector_store %arg12[%c0_88, %c0_89, %c0_90], %153 {strides = array<i32>} : memref<1x1x50xf32, #tpu.memory_space<vmem>>, vector<1x1x50xf32>,
    %cst_91 = arith.constant dense<0.000000e+00> : vector<1x10xf32>
    %154 = tpu.matmul %150, %4, %cst_91 {dimension_numbers = #tpu.dot_dimension_numbers<[1], [0], [0], [1], [0, 0, 1, 1], [], []>} : vector<1x50xf32>, vector<50x10xf32>, vector<1x10xf32> -> vector<1x10xf32>
    %155 = arith.addf %154, %3 : vector<1x10xf32>
    %cst_92 = arith.constant 0.000000e+00 : f32
    %156 = vector.broadcast %cst_92 : f32 to vector<1x10xf32>
    %157 = arith.maximumf %155, %156 : vector<1x10xf32>
    %c0_93 = arith.constant 0 : index
    %c0_94 = arith.constant 0 : index
    %c0_95 = arith.constant 0 : index
    %158 = vector.load %arg13[%c0_93, %c0_94, %c0_95] : memref<1x1x10xf32, #tpu.memory_space<vmem>>, vector<1x1x10xf32>
    %159 = vector.shape_cast %158 : vector<1x1x10xf32> to vector<1x10xf32>
    %160 = vector.shape_cast %157 : vector<1x10xf32> to vector<1x1x10xf32>
    tpu.vector_store %arg13[%c0_93, %c0_94, %c0_95], %160 {strides = array<i32>} : memref<1x1x10xf32, #tpu.memory_space<vmem>>, vector<1x1x10xf32>,
    return
  }
  func.func @transform_0(%arg0: i32) -> (i32, i32, i32, i32) {
    %c0_i32 = arith.constant 0 : i32
    %c0_i32_0 = arith.constant 0 : i32
    %c0_i32_1 = arith.constant 0 : i32
    %c0_i32_2 = arith.constant 0 : i32
    return %arg0, %c0_i32, %c0_i32_0, %c0_i32_1 : i32, i32, i32, i32
  }
  func.func @transform_1(%arg0: i32) -> (i32, i32, i32) {
    %c0_i32 = arith.constant 0 : i32
    %c0_i32_0 = arith.constant 0 : i32
    %c0_i32_1 = arith.constant 0 : i32
    %c0_i32_2 = arith.constant 0 : i32
    return %c0_i32, %c0_i32_0, %c0_i32_1 : i32, i32, i32
  }
  func.func @transform_2(%arg0: i32) -> (i32, i32) {
    %c0_i32 = arith.constant 0 : i32
    %c0_i32_0 = arith.constant 0 : i32
    %c0_i32_1 = arith.constant 0 : i32
    return %c0_i32, %c0_i32_0 : i32, i32
  }
  func.func @transform_3(%arg0: i32) -> (i32, i32, i32) {
    %c0_i32 = arith.constant 0 : i32
    %c0_i32_0 = arith.constant 0 : i32
    %c0_i32_1 = arith.constant 0 : i32
    %c0_i32_2 = arith.constant 0 : i32
    return %c0_i32, %c0_i32_0, %c0_i32_1 : i32, i32, i32
  }
  func.func @transform_4(%arg0: i32) -> (i32, i32) {
    %c0_i32 = arith.constant 0 : i32
    %c0_i32_0 = arith.constant 0 : i32
    %c0_i32_1 = arith.constant 0 : i32
    return %c0_i32, %c0_i32_0 : i32, i32
  }
  func.func @transform_5(%arg0: i32) -> (i32, i32, i32) {
    %c0_i32 = arith.constant 0 : i32
    %c0_i32_0 = arith.constant 0 : i32
    %c0_i32_1 = arith.constant 0 : i32
    %c0_i32_2 = arith.constant 0 : i32
    return %c0_i32, %c0_i32_0, %c0_i32_1 : i32, i32, i32
  }
  func.func @transform_6(%arg0: i32) -> (i32, i32) {
    %c0_i32 = arith.constant 0 : i32
    %c0_i32_0 = arith.constant 0 : i32
    %c0_i32_1 = arith.constant 0 : i32
    return %c0_i32, %c0_i32_0 : i32, i32
  }
  func.func @transform_7(%arg0: i32) -> (i32, i32) {
    %c0_i32 = arith.constant 0 : i32
    %c0_i32_0 = arith.constant 0 : i32
    %c0_i32_1 = arith.constant 0 : i32
    return %c0_i32, %c0_i32_0 : i32, i32
  }
  func.func @transform_8(%arg0: i32) -> (i32, i32) {
    %c0_i32 = arith.constant 0 : i32
    %c0_i32_0 = arith.constant 0 : i32
    %c0_i32_1 = arith.constant 0 : i32
    return %c0_i32, %c0_i32_0 : i32, i32
  }
  func.func @transform_9(%arg0: i32) -> (i32, i32, i32, i32) {
    %c0_i32 = arith.constant 0 : i32
    %c0_i32_0 = arith.constant 0 : i32
    %c0_i32_1 = arith.constant 0 : i32
    %c0_i32_2 = arith.constant 0 : i32
    return %arg0, %c0_i32, %c0_i32_0, %c0_i32_1 : i32, i32, i32, i32
  }
  func.func @transform_10(%arg0: i32) -> (i32, i32, i32) {
    %c0_i32 = arith.constant 0 : i32
    %c0_i32_0 = arith.constant 0 : i32
    %c0_i32_1 = arith.constant 0 : i32
    return %arg0, %c0_i32, %c0_i32_0 : i32, i32, i32
  }
  func.func @transform_11(%arg0: i32) -> (i32, i32, i32) {
    %c0_i32 = arith.constant 0 : i32
    %c0_i32_0 = arith.constant 0 : i32
    %c0_i32_1 = arith.constant 0 : i32
    return %arg0, %c0_i32, %c0_i32_0 : i32, i32, i32
  }
  func.func @transform_12(%arg0: i32) -> (i32, i32, i32) {
    %c0_i32 = arith.constant 0 : i32
    %c0_i32_0 = arith.constant 0 : i32
    %c0_i32_1 = arith.constant 0 : i32
    return %arg0, %c0_i32, %c0_i32_0 : i32, i32, i32
  }
}

</mosaic_0001>

<bundles_post_ra>
// kernel: net_forward.1
= control target key start
LH: loop header
LB: loop body
LE: loop exit
PB: predicated region body
PF: predicated region fallthrough
CT: control target
= control target key end

     0   :  { %s5980_s0 = inlined_call_operand.vmem [shape: f32[2,4,7,28], index: 0, kind: input, shape index: {}]   ;;  %s5981_s1 = inlined_call_operand.vmem [shape: f32[2,140,120], index: 1, kind: input, shape index: {}]   ;;  %s5982_s2 = inlined_call_operand.vmem [shape: f32[1,120], index: 2, kind: input, shape index: {}]   ;;  %s5983_s3 = inlined_call_operand.vmem [shape: f32[2,600,80], index: 3, kind: input, shape index: {}]   ;;  %s5984_s4 = inlined_call_operand.vmem [shape: f32[1,80], index: 4, kind: input, shape index: {}]   ;;  %s5985_s5 = inlined_call_operand.vmem [shape: f32[4,80,50], index: 5, kind: input, shape index: {}]   ;;  %s5986_s6 = inlined_call_operand.vmem [shape: f32[1,50], index: 6, kind: input, shape index: {}]   ;;  %s5987_s7 = inlined_call_operand.vmem [shape: f32[50,10], index: 7, kind: input, shape index: {}]   ;;  %s5988_s8 = inlined_call_operand.vmem [shape: f32[1,10], index: 8, kind: input, shape index: {}]   ;;  %s5989_s9 = inlined_call_operand.vmem [shape: f32[2,2,6,120], index: 9, kind: output, shape index: {0}]   ;;  %s5990_s10 = inlined_call_operand.vmem [shape: f32[2,4,80], index: 10, kind: output, shape index: {1}]   ;;  %s5991_s11 = inlined_call_operand.hbm [shape: f32[2,1,50], index: 11, kind: output, shape index: {2}]   ;;  %s5992_s12 = inlined_call_operand.hbm [shape: f32[2,1,10], index: 12, kind: output, shape index: {3}]  }
   0x1   :  { %6096 = sst [smem:[#allocation102_spill]] %s5980_s0 }
   0x2   :  { %6097 = sst [smem:[#allocation103_spill]] %s5981_s1 }
   0x3   :  { %6098 = sst [smem:[#allocation104_spill]] %s5982_s2 }
   0x4   :  { %6099 = sst [smem:[#allocation105_spill]] %s5983_s3 }
   0x5   :  { %18 = vsyncpa [#allocation3], 0 }
   0x6   :  { %20 = vsyncpa [#allocation3 + $0x1], 0 }
   0x7   :  { %21 = vsyncpa [#allocation5], 0 }
   0x8   :  { %23 = vsyncpa [#allocation5 + $0x1], 0  ;;  %s3855_s21 = smov 0   ;;  %s3857_s22 = smov 0  }
   0x9   :  { %s3859_s23 = smov 0   ;;  %s3861_s24 = smov 0  }
   0xa LB: > { %s3876_s25 = sadd.s32 4294967295, %s3777_s24   ;;  %s2860_s26 = sadd.s32 4294967294, %s3777_s24   ;;  %s3777_s24 = sphi %s3861_s24, %s6304_s24   ;;  %s3773_s23 = sphi %s3859_s23, %s6303_s23   ;;  %s3769_s22 = sphi %s3857_s22, %s6302_s22   ;;  %s3765_s21 = sphi %s3855_s21, %s6301_s21  }
   0xb   : > { %s3880_s27 = sadd.s32 1, %s3777_s24   ;;  %s282_s28 = sadd.s32 1, %s3773_s23 }
   0xc   : > { %s279_s29 = ssub.s32 %s3777_s24, %s3880_s27  ;;  %p292_p0 = scmp.ne.s32.totalorder %s3773_s23, %s3769_s22 }
   0xd   : > { %p280_p1 = scmp.eq.s32.totalorder %s279_s29, 0  ;;  %p293_p2 = scmp.eq.s32.totalorder %s3876_s25, 1 }
   0xe   : > { %p298_p3 = scmp.ne.s32.totalorder %s3769_s22, %s3765_s21  ;;  %p299_p4 = scmp.eq.s32.totalorder %s2860_s26, 1 }
   0xf   : > { %s3891_s30 = scalar_select %p280_p1, %s3773_s23, %s282_s28  }
  0x10   : > { %p3893_p5 = por %p293_p2, %p292_p0  ;;  %p3897_p6 = por %p299_p4, %p298_p3 }
  0x11   : > { %6100 = sst [smem:[#allocation8_spill]] %s3891_s30  ;;  %p2863_p7 = scmp.ge.s32.totalorder %s3777_s24, 1 }
  0x12   : > { %p375_p8 = scmp.lt.s32.totalorder %s3777_s24, 3 }
  0x14   : > { %p376_p9 = pnand %p2863_p7, %p375_p8 }
  0x16   : > { %379 = sbr.rel (%p376_p9) target bundleno = 1376 (0x560), region = 56 }
  0x1b   : > { %p429_p10 = scmp.lt.s32.totalorder %s3876_s25, 1  ;;  %s6103_s1 = sld [smem:[#allocation103_spill]]  ;;  %v6000_v2 = vmov 0.0   ;;  %vm504_vm0 = vcmask 1043456   ;;  %vm475_vm1 = vcmask 228352   ;;  %vm477_vm2 = vcmask 457728  }
  0x1c   : > { %508 = vmatprep.subr.mxu0 %v6000_v2  ;;  %600 = vmatprep.subr.mxu1 %v6000_v2  ;;  %s6104_s0 = sld [smem:[#allocation102_spill]]  ;;  %s3781_s20 = smov 84   ;;  %vm501_vm3 = vcmask 97280   ;;  %vm479_vm4 = vcmask 687104   ;;  %vm481_vm5 = vcmask 916480   ;;  %vm840_vm6 = vcmask 979968  }
  0x1d   : > { %s3927_s29 = scalar_select %p429_p10, %s3876_s25, 1  ;;  %vm1226_vm7 = vcmask 982016   ;;  %vm1229_vm8 = vcmask 850944   ;;  %vm1231_vm9 = vcmask 785408   ;;  %vm3787_vm10 = vmmov 0  }
  0x1e   : > { %s3783_s18 = smov 112   ;;  %s6105_s26 = smov 28   ;;  %vm1308_vm11 = vcmask 719872   ;;  %vm2257_vm12 = vcmask 650240   ;;  %vm2269_vm13 = vcmask 654336   ;;  %vm2606_vm14 = vcmask 1041408  }
  0x1f   : > { %s3043_s19 = sshll.u32 %s3927_s29, 5  ;;  %s6106_s15 = smov 56   ;;  %vm2602_vm15 = vcmask 408576  }
  0x20   : > { %s6107_s3 = sld [smem:[#allocation105_spill]]  ;;  %s3786_s16 = smov 104  }
  0x21   : > { %v3907_v0 = vld [vmem:[%s6103_s1 + $0x78] sm:$0xff]  ;;  %v3912_v1 = vld [vmem:[%s6103_s1 + $0x108] sm:$0xff]  ;;  %v3919_v3 = vld [vmem:[%s6103_s1 + $0x70] sm:$0xff]  ;;  %s6108_s2 = sld [smem:[#allocation104_spill]]  ;;  %s6125_s17 = smov 96  }
  0x22   : > { %v3924_v4 = vld [vmem:[%s6103_s1 + $0x100] sm:$0xff]  ;;  %509 = vmatpush1.msra.mxu0 %v3907_v0  ;;  %601 = vmatpush1.msra.mxu1 %v3912_v1  ;;  %v3936_v5 = vld [vmem:[%s6103_s1 + $0x68] sm:$0xff]  ;;  %v3941_v6 = vld [vmem:[%s6103_s1 + $0xf8] sm:$0xff]  ;;  %s433_s28 = scalar_lea.vmem %s6104_s0, %s3043_s19  ;;  %s5995_s19 = smov 28  }
  0x23   : > { %510 = vmatprep.subr.mxu0 %v6000_v2  ;;  %602 = vmatprep.subr.mxu1 %v6000_v2  ;;  %v3954_v7 = vld [vmem:[%s6103_s1 + $0x60] sm:$0xff]  ;;  %v3956_v8 = vld [vmem:[%s433_s28 + $0x8] sm:$0x7f]  ;;  %v3958_v9 = vld [vmem:[%s433_s28 + $0x18] sm:$0x7f] }
  0x24   : > { %511 = vmatpush1.msra.mxu0 %v3919_v3  ;;  %603 = vmatpush1.msra.mxu1 %v3924_v4  ;;  %v3965_v10 = vld [vmem:[%s6103_s1 + $0xf0] sm:$0xff]  ;;  %v3971_v11 = vld [vmem:[%s433_s28] sm:$0x7f]  ;;  %v3985_v14 = vld [vmem:[%s6103_s1 + $0x58] sm:$0xff]  ;;  %v680_v20 = vrot.slane %v3956_v8, 1  ;;  %v1053_v34 = vrot.slane %v3958_v9, 1 }
  0x25   : > { %512 = vmatprep.subr.mxu0 %v6000_v2  ;;  %604 = vmatprep.subr.mxu1 %v6000_v2  ;;  %v3973_v12 = vld [vmem:[%s433_s28 + $0x10] sm:$0x7f]  ;;  %v3976_v13 = vrot.slane %v3971_v11, 1  ;;  %v3990_v15 = vld [vmem:[%s6103_s1 + $0xe8] sm:$0xff]  ;;  %s5993_s28 = smov 56   ;;  %v4006_v17 = vld [vmem:[%s6103_s1 + $0xe0] sm:$0xff] }
  0x26   : > { %513 = vmatpush1.msra.mxu0 %v3936_v5  ;;  %605 = vmatpush1.msra.mxu1 %v3941_v6  ;;  %v4001_v16 = vld [vmem:[%s6103_s1 + $0x50] sm:$0xff]  ;;  %v4017_v18 = vld [vmem:[%s6103_s1 + $0x48] sm:$0xff]  ;;  %v4022_v19 = vld [vmem:[%s6103_s1 + $0xd8] sm:$0xff]  ;;  %v851_v27 = vrot.slane %v3973_v12, 1 }
  0x27   : > { %459 = vrot.lane.b32.xlu0 %v3956_v8, %s5995_s19  ;;  %467 = vrot.lane.b32.xlu1 %v3958_v9, %s3781_s20  ;;  %v4036_v21 = vld [vmem:[%s6103_s1 + $0x40] sm:$0xff]  ;;  %v4041_v22 = vld [vmem:[%s6103_s1 + $0xd0] sm:$0xff] }
  0x28   : > { %514 = vmatprep.subr.mxu0 %v6000_v2  ;;  %606 = vmatprep.subr.mxu1 %v6000_v2  ;;  %v4051_v23 = vld [vmem:[%s6103_s1 + $0x38] sm:$0xff]  ;;  %v4056_v24 = vld [vmem:[%s6103_s1 + $0xc8] sm:$0xff]  ;;  %v4067_v25 = vld [vmem:[%s6103_s1 + $0x30] sm:$0xff] }
  0x29   : > { %515 = vmatpush1.msra.mxu0 %v3954_v7  ;;  %607 = vmatpush1.msra.mxu1 %v3965_v10  ;;  %v4072_v26 = vld [vmem:[%s6103_s1 + $0xc0] sm:$0xff]  ;;  %v4086_v28 = vld [vmem:[%s6103_s1 + $0x28] sm:$0xff]  ;;  %v4091_v29 = vld [vmem:[%s6103_s1 + $0xb8] sm:$0xff] }
  0x2a   : > { %516 = vmatprep.subr.mxu0 %v6000_v2  ;;  %608 = vmatprep.subr.mxu1 %v6000_v2  ;;  %v4100_v30 = vld [vmem:[%s6103_s1 + $0x20] sm:$0xff]  ;;  %v4105_v31 = vld [vmem:[%s6103_s1 + $0xb0] sm:$0xff]  ;;  %v4116_v32 = vld [vmem:[%s6103_s1 + $0x18] sm:$0xff] }
  0x2b   : > { %463 = vrot.lane.b32.xlu0 %v3973_v12, %s5993_s28  ;;  %472 = vrot.lane.b32.xlu1 %v3976_v13, %s3783_s18  ;;  %v4121_v33 = vld [vmem:[%s6103_s1 + $0xa8] sm:$0xff]  ;;  %v4134_v35 = vld [vmem:[%s6103_s1 + $0x10] sm:$0xff] }
  0x2c   : > { %517 = vmatpush1.msra.mxu0 %v3985_v14  ;;  %609 = vmatpush1.msra.mxu1 %v3990_v15  ;;  %v4139_v36 = vld [vmem:[%s6103_s1 + $0xa0] sm:$0xff]  ;;  %v4148_v37 = vld [vmem:[%s6103_s1 + $0x8] sm:$0xff]  ;;  %v4153_v38 = vld [vmem:[%s6103_s1 + $0x98] sm:$0xff] }
  0x2d   : > { %518 = vmatprep.subr.mxu0 %v6000_v2  ;;  %610 = vmatprep.subr.mxu1 %v6000_v2  ;;  %v4162_v39 = vld [vmem:[%s6103_s1] sm:$0xff]  ;;  %v4167_v40 = vld [vmem:[%s6103_s1 + $0x90] sm:$0xff]  ;;  %v4176_v41 = vld [vmem:[%s6103_s1 + $0x88] sm:$0xf] }
  0x2e   : > { %519 = vmatpush1.msra.mxu0 %v4001_v16  ;;  %611 = vmatpush1.msra.mxu1 %v4006_v17  ;;  %v4181_v42 = vld [vmem:[%s6103_s1 + $0x118] sm:$0xf]  ;;  %v4190_v43 = vld [vmem:[%s6103_s1 + $0x80] sm:$0xff]  ;;  %v4195_v44 = vld [vmem:[%s6103_s1 + $0x110] sm:$0xff] }
  0x2f   : > { %671 = vrot.lane.b32.xlu0 %v3973_v12, %s5995_s19  ;;  %674 = vrot.lane.b32.xlu1 %v3958_v9, %s5993_s28  ;;  %s3044_s19 = sshll.u32 %s3927_s29, 4 }
  0x30   : > { %520 = vmatprep.subr.mxu0 %v6000_v2  ;;  %612 = vmatprep.subr.mxu1 %v6000_v2  ;;  %s4567_s28 = scalar_lea.vmem %s5989_s9, %s3044_s19  ;;  %s2868_s19 = sshll.u32 %s3927_s29, 2 }
  0x31   : > { %521 = vmatpush1.msra.mxu0 %v4017_v18  ;;  %613 = vmatpush1.msra.mxu1 %v4022_v19  ;;  %s442_s0 = scalar_lea.vmem %s5990_s10, %s2868_s19 }
  0x32   : > { %522 = vmatprep.subr.mxu0 %v6000_v2  ;;  %614 = vmatprep.subr.mxu1 %v6000_v2 }
  0x33   : > { %677 = vrot.lane.b32.xlu0 %v3976_v13, %s3781_s20  ;;  %681 = vrot.lane.b32.xlu1 %v680_v20, %s3783_s18 }
  0x34   : > { %523 = vmatpush1.msra.mxu0 %v4036_v21  ;;  %615 = vmatpush1.msra.mxu1 %v4041_v22 }
  0x35   : > { %524 = vmatprep.subr.mxu0 %v6000_v2  ;;  %616 = vmatprep.subr.mxu1 %v6000_v2 }
  0x36   : > { %525 = vmatpush1.msra.mxu0 %v4051_v23  ;;  %617 = vmatpush1.msra.mxu1 %v4056_v24 }
  0x37   : > { %842 = vrot.lane.b32.xlu0 %v3958_v9, %s6105_s26  ;;  %845 = vrot.lane.b32.xlu1 %v3976_v13, %s6106_s15 }
  0x38   : > { %526 = vmatprep.subr.mxu0 %v6000_v2  ;;  %618 = vmatprep.subr.mxu1 %v6000_v2 }
  0x39   : > { %527 = vmatpush1.msra.mxu0 %v4067_v25  ;;  %619 = vmatpush1.msra.mxu1 %v4072_v26 }
  0x3a   : > { %528 = vmatprep.subr.mxu0 %v6000_v2  ;;  %620 = vmatprep.subr.mxu1 %v6000_v2 }
  0x3b   : > { %848 = vrot.lane.b32.xlu0 %v680_v20, %s3781_s20  ;;  %852 = vrot.lane.b32.xlu1 %v851_v27, %s3783_s18 }
  0x3c   : > { %529 = vmatpush1.msra.mxu0 %v4086_v28  ;;  %621 = vmatpush1.msra.mxu1 %v4091_v29 }
  0x3d   : > { %530 = vmatprep.subr.mxu0 %v6000_v2  ;;  %622 = vmatprep.subr.mxu1 %v6000_v2 }
  0x3e   : > { %531 = vmatpush1.msra.mxu0 %v4100_v30  ;;  %623 = vmatpush1.msra.mxu1 %v4105_v31 }
  0x3f   : > { %1044 = vrot.lane.b32.xlu0 %v3976_v13, %s6105_s26  ;;  %1047 = vrot.lane.b32.xlu1 %v680_v20, %s6106_s15  ;;  %s5997_s26 = smov 96   ;;  %s3785_s15 = smov 120  }
  0x40   : > { %532 = vmatprep.subr.mxu0 %v6000_v2  ;;  %624 = vmatprep.subr.mxu1 %v6000_v2 }
  0x41   : > { %533 = vmatpush1.msra.mxu0 %v4116_v32  ;;  %625 = vmatpush1.msra.mxu1 %v4121_v33 }
  0x42   : > { %534 = vmatprep.subr.mxu0 %v6000_v2  ;;  %626 = vmatprep.subr.mxu1 %v6000_v2 }
  0x43   : > { %1050 = vrot.lane.b32.xlu0 %v851_v27, %s3781_s20  ;;  %1054 = vrot.lane.b32.xlu1 %v1053_v34, %s3783_s18 }
  0x44   : > { %535 = vmatpush1.msra.mxu0 %v4134_v35  ;;  %627 = vmatpush1.msra.mxu1 %v4139_v36 }
  0x45   : > { %536 = vmatprep.subr.mxu0 %v6000_v2  ;;  %628 = vmatprep.subr.mxu1 %v6000_v2 }
  0x46   : > { %537 = vmatpush1.msra.mxu0 %v4148_v37  ;;  %629 = vmatpush1.msra.mxu1 %v4153_v38 }
  0x47   : > { %538 = vmatprep.subr.mxu0 %v6000_v2  ;;  %630 = vmatprep.subr.mxu1 %v6000_v2 }
  0x48   : > { %539 = vmatpush1.msra.mxu0 %v4162_v39  ;;  %631 = vmatpush1.msra.mxu1 %v4167_v40 }
  0x49   : > { %568 = vmatprep.subr.mxu0 %v6000_v2  ;;  %660 = vmatprep.subr.mxu1 %v6000_v2 }
  0x4a   : > { %2869 = vmatpush2.msk.msra.mxu0 %vm504_vm0, %v4176_v41  ;;  %2889 = vmatpush2.msk.msra.mxu1 %vm504_vm0, %v4181_v42 }
  0x4b   : > { %570 = vmatprep.subr.mxu0 %v6000_v2  ;;  %662 = vmatprep.subr.mxu1 %v6000_v2 }
  0x4c   : > { %571 = vmatpush2.msra.mxu0 %v4190_v43  ;;  %663 = vmatpush2.msra.mxu1 %v4195_v44 }
  0x4d   : > { %690 = vmatprep.subr.mxu0 %v6000_v2  ;;  %761 = vmatprep.subr.mxu1 %v6000_v2 }
  0x99   : > { %v460_v45 = vpop.permute.xlu0 %459  ;;  %v468_v46 = vpop.permute.xlu1 %467 }
  0x9a   : > { %v476_v47 = vsel %vm475_vm1, %v3971_v11, %v460_v45 }
  0x9d   : > { %v464_v48 = vpop.permute.xlu0 %463  ;;  %v473_v49 = vpop.permute.xlu1 %472 }
  0x9e   : > { %v478_v50 = vsel %vm477_vm2, %v476_v47, %v464_v48  ;;  %2870 = vmatprep.mubr.msk.f32.mxu0 %vm501_vm3, %v473_v49  ;;  %2890 = vmatprep.mubr.msk.f32.mxu1 %vm501_vm3, %v473_v49 }
  0x9f   : > { %v480_v51 = vsel %vm479_vm4, %v478_v50, %v468_v46  ;;  %v4621_v50 = vld [vmem:[%s6107_s3 + $0x1d8] sm:$0xff] }
  0xa0   : > { %v482_v52 = vsel %vm481_vm5, %v480_v51, %v473_v49  ;;  %v4615_v49 = vld [vmem:[%s6107_s3 + $0xd0] sm:$0xff] }
  0xa1   : > { %573 = vmatmul.mubr.f32.vlgmr.msra.gmra.mxu0 %v482_v52  ;;  %665 = vmatmul.mubr.f32.vlgmr.msra.gmra.mxu1 %v482_v52  ;;  %v4214_v53 = vpop.permute.xlu0 %671  ;;  %v4216_v54 = vpop.permute.xlu1 %674  ;;  %v4627_v51 = vld [vmem:[%s6107_s3 + $0x50] sm:$0xff]  ;;  %v4633_v52 = vld [vmem:[%s6107_s3 + $0x158] sm:$0xff] }
  0xa2   : > { %691 = vmatpush1.msra.mxu0 %v3907_v0  ;;  %762 = vmatpush1.msra.mxu1 %v3912_v1  ;;  %v684_v34 = vsel %vm475_vm1, %v3956_v8, %v4214_v53  ;;  %v4642_v53 = vld [vmem:[%s6107_s3 + $0xc8] sm:$0xff] }
  0xa3   : > { %692 = vmatprep.subr.mxu0 %v6000_v2  ;;  %763 = vmatprep.subr.mxu1 %v6000_v2  ;;  %v685_v45 = vsel %vm477_vm2, %v684_v34, %v4216_v54  ;;  %v4647_v54 = vld [vmem:[%s6107_s3 + $0x1d0] sm:$0xff]  ;;  %v4741_v34 = vld [vmem:[%s6107_s3 + $0x138] sm:$0xff] }
  0xa4   : > { %693 = vmatpush1.msra.mxu0 %v3919_v3  ;;  %764 = vmatpush1.msra.mxu1 %v3924_v4 }
  0xa5   : > { %694 = vmatprep.subr.mxu0 %v6000_v2  ;;  %765 = vmatprep.subr.mxu1 %v6000_v2  ;;  %v4226_v55 = vpop.permute.xlu0 %677  ;;  %v4228_v56 = vpop.permute.xlu1 %681 }
  0xa6   : > { %695 = vmatpush1.msra.mxu0 %v3936_v5  ;;  %766 = vmatpush1.msra.mxu1 %v3941_v6  ;;  %v686_v8 = vsel %vm479_vm4, %v685_v45, %v4226_v55  ;;  %v4654_v55 = vld [vmem:[%s6107_s3 + $0x48] sm:$0xff] }
  0xa7   : > { %696 = vmatprep.subr.mxu0 %v6000_v2  ;;  %767 = vmatprep.subr.mxu1 %v6000_v2  ;;  %v687_v46 = vsel %vm481_vm5, %v686_v8, %v4228_v56  ;;  %v4748_v45 = vld [vmem:[%s6107_s3 + $0x28] sm:$0xff]  ;;  %v4753_v8 = vld [vmem:[%s6107_s3 + $0x1b0] sm:$0xff] }
  0xa8   : > { %697 = vmatpush1.msra.mxu0 %v3954_v7  ;;  %768 = vmatpush1.msra.mxu1 %v3965_v10 }
  0xa9   : > { %698 = vmatprep.subr.mxu0 %v6000_v2  ;;  %769 = vmatprep.subr.mxu1 %v6000_v2  ;;  %v843_v57 = vpop.permute.xlu0 %842  ;;  %v846_v58 = vpop.permute.xlu1 %845 }
  0xaa   : > { %699 = vmatpush1.msra.mxu0 %v3985_v14  ;;  %770 = vmatpush1.msra.mxu1 %v3990_v15  ;;  %v855_v59 = vsel %vm475_vm1, %v3973_v12, %v843_v57  ;;  %v4662_v57 = vld [vmem:[%s6107_s3 + $0xc0] sm:$0xff] }
  0xab   : > { %700 = vmatprep.subr.mxu0 %v6000_v2  ;;  %771 = vmatprep.subr.mxu1 %v6000_v2  ;;  %v856_v60 = vsel %vm477_vm2, %v855_v59, %v846_v58  ;;  %v4667_v58 = vld [vmem:[%s6107_s3 + $0x150] sm:$0xff]  ;;  %v4674_v59 = vld [vmem:[%s6107_s3 + $0x40] sm:$0xff] }
  0xac   : > { %701 = vmatpush1.msra.mxu0 %v4001_v16  ;;  %772 = vmatpush1.msra.mxu1 %v4006_v17 }
  0xad   : > { %702 = vmatprep.subr.mxu0 %v6000_v2  ;;  %773 = vmatprep.subr.mxu1 %v6000_v2  ;;  %v849_v61 = vpop.permute.xlu0 %848  ;;  %v4254_v63 = vpop.permute.xlu1 %852 }
  0xae   : > { %703 = vmatpush1.msra.mxu0 %v4017_v18  ;;  %774 = vmatpush1.msra.mxu1 %v4022_v19  ;;  %v4252_v62 = vsel %vm479_vm4, %v856_v60, %v849_v61  ;;  %v4679_v60 = vld [vmem:[%s6107_s3 + $0x1c8] sm:$0xff]  ;;  %v4688_v61 = vld [vmem:[%s6107_s3 + $0xb8] sm:$0xff] }
  0xaf   : > { %704 = vmatprep.subr.mxu0 %v6000_v2  ;;  %775 = vmatprep.subr.mxu1 %v6000_v2  ;;  %v858_v47 = vsel %vm481_vm5, %v4252_v62, %v4254_v63  ;;  %v4693_v62 = vld [vmem:[%s6107_s3 + $0x148] sm:$0xff] }
  0xb0   : > { %705 = vmatpush1.msra.mxu0 %v4036_v21  ;;  %776 = vmatpush1.msra.mxu1 %v4041_v22 }
  0xb1   : > { %706 = vmatprep.subr.mxu0 %v6000_v2  ;;  %777 = vmatprep.subr.mxu1 %v6000_v2  ;;  %v1045_v11 = vpop.permute.xlu0 %1044  ;;  %v1048_v13 = vpop.permute.xlu1 %1047 }
  0xb2   : > { %707 = vmatpush1.msra.mxu0 %v4051_v23  ;;  %778 = vmatpush1.msra.mxu1 %v4056_v24  ;;  %v1057_v12 = vsel %vm475_vm1, %v3958_v9, %v1045_v11  ;;  %v4705_v11 = vld [vmem:[%s6107_s3 + $0x1c0] sm:$0xff] }
  0xb3   : > { %708 = vmatprep.subr.mxu0 %v6000_v2  ;;  %779 = vmatprep.subr.mxu1 %v6000_v2  ;;  %v1058_v20 = vsel %vm477_vm2, %v1057_v12, %v1048_v13  ;;  %v4712_v12 = vld [vmem:[%s6107_s3 + $0xb0] sm:$0xff]  ;;  %v4717_v13 = vld [vmem:[%s6107_s3 + $0x140] sm:$0xff] }
  0xb4   : > { %709 = vmatpush1.msra.mxu0 %v4067_v25  ;;  %780 = vmatpush1.msra.mxu1 %v4072_v26 }
  0xb5   : > { %710 = vmatprep.subr.mxu0 %v6000_v2  ;;  %781 = vmatprep.subr.mxu1 %v6000_v2  ;;  %v1051_v27 = vpop.permute.xlu0 %1050 }
  0xb6   : > { %711 = vmatpush1.msra.mxu0 %v4086_v28  ;;  %782 = vmatpush1.msra.mxu1 %v4091_v29  ;;  %v4276_v9 = vsel %vm479_vm4, %v1058_v20, %v1051_v27  ;;  %v4724_v20 = vld [vmem:[%s6107_s3 + $0x30] sm:$0xff]  ;;  %v4729_v27 = vld [vmem:[%s6107_s3 + $0x1b8] sm:$0xff] }
  0xb7   : > { %712 = vmatprep.subr.mxu0 %v6000_v2  ;;  %783 = vmatprep.subr.mxu1 %v6000_v2 }
  0xb8   : > { %713 = vmatpush1.msra.mxu0 %v4100_v30  ;;  %784 = vmatpush1.msra.mxu1 %v4105_v31 }
  0xb9   : > { %714 = vmatprep.subr.mxu0 %v6000_v2  ;;  %785 = vmatprep.subr.mxu1 %v6000_v2 }
  0xba   : > { %715 = vmatpush1.msra.mxu0 %v4116_v32  ;;  %786 = vmatpush1.msra.mxu1 %v4121_v33 }
  0xbb   : > { %716 = vmatprep.subr.mxu0 %v6000_v2  ;;  %787 = vmatprep.subr.mxu1 %v6000_v2 }
  0xbc   : > { %717 = vmatpush1.msra.mxu0 %v4134_v35  ;;  %788 = vmatpush1.msra.mxu1 %v4139_v36 }
  0xbd   : > { %718 = vmatprep.subr.mxu0 %v6000_v2  ;;  %789 = vmatprep.subr.mxu1 %v6000_v2 }
  0xbe   : > { %719 = vmatpush1.msra.mxu0 %v4148_v37  ;;  %790 = vmatpush1.msra.mxu1 %v4153_v38 }
  0xbf   : > { %720 = vmatprep.subr.mxu0 %v6000_v2  ;;  %791 = vmatprep.subr.mxu1 %v6000_v2 }
  0xc0   : > { %721 = vmatpush1.msra.mxu0 %v4162_v39  ;;  %792 = vmatpush1.msra.mxu1 %v4167_v40 }
  0xc1   : > { %750 = vmatprep.subr.mxu0 %v6000_v2  ;;  %821 = vmatprep.subr.mxu1 %v6000_v2 }
  0xc2   : > { %2891 = vmatpush2.msk.msra.mxu0 %vm504_vm0, %v4176_v41  ;;  %2893 = vmatpush2.msk.msra.mxu1 %vm504_vm0, %v4181_v42  ;;  %v4386_v41 = vld [vmem:[%s6103_s1 + $0x88] sm:$0xf]  ;;  %v4391_v42 = vld [vmem:[%s6103_s1 + $0x118] sm:$0xf] }
  0xc3   : > { %752 = vmatprep.subr.mxu0 %v6000_v2  ;;  %823 = vmatprep.subr.mxu1 %v6000_v2 }
  0xc4   : > { %753 = vmatpush2.msra.mxu0 %v4190_v43  ;;  %2892 = vmatprep.mubr.msk.f32.mxu0 %vm501_vm3, %v4228_v56 }
  0xc5   : > { %824 = vmatpush2.msra.mxu1 %v4195_v44  ;;  %2894 = vmatprep.mubr.msk.f32.mxu1 %vm501_vm3, %v4228_v56 }
  0xc6   : > { %755 = vmatmul.mubr.f32.vlgmr.msra.gmra.mxu0 %v687_v46  ;;  %826 = vmatmul.mubr.f32.vlgmr.msra.gmra.mxu1 %v687_v46  ;;  %v4760_v46 = vld [vmem:[%s6107_s3 + $0xa0] sm:$0xff] }
  0xc7   : > { %882 = vmatprep.subr.mxu0 %v6000_v2  ;;  %973 = vmatprep.subr.mxu1 %v6000_v2 }
  0xc8   : > { %883 = vmatpush1.msra.mxu0 %v3907_v0  ;;  %974 = vmatpush1.msra.mxu1 %v3912_v1 }
  0xc9   : > { %884 = vmatprep.subr.mxu0 %v6000_v2  ;;  %975 = vmatprep.subr.mxu1 %v6000_v2 }
  0xca   : > { %885 = vmatpush1.msra.mxu0 %v3919_v3  ;;  %976 = vmatpush1.msra.mxu1 %v3924_v4 }
  0xcb   : > { %886 = vmatprep.subr.mxu0 %v6000_v2  ;;  %977 = vmatprep.subr.mxu1 %v6000_v2 }
  0xcc   : > { %887 = vmatpush1.msra.mxu0 %v3936_v5  ;;  %978 = vmatpush1.msra.mxu1 %v3941_v6 }
  0xcd   : > { %888 = vmatprep.subr.mxu0 %v6000_v2  ;;  %979 = vmatprep.subr.mxu1 %v6000_v2 }
  0xce   : > { %889 = vmatpush1.msra.mxu0 %v3954_v7  ;;  %980 = vmatpush1.msra.mxu1 %v3965_v10 }
  0xcf   : > { %890 = vmatprep.subr.mxu0 %v6000_v2  ;;  %981 = vmatprep.subr.mxu1 %v6000_v2 }
  0xd0   : > { %891 = vmatpush1.msra.mxu0 %v3985_v14  ;;  %982 = vmatpush1.msra.mxu1 %v3990_v15 }
  0xd1   : > { %892 = vmatprep.subr.mxu0 %v6000_v2  ;;  %983 = vmatprep.subr.mxu1 %v6000_v2 }
  0xd2   : > { %893 = vmatpush1.msra.mxu0 %v4001_v16  ;;  %984 = vmatpush1.msra.mxu1 %v4006_v17 }
  0xd3   : > { %894 = vmatprep.subr.mxu0 %v6000_v2  ;;  %985 = vmatprep.subr.mxu1 %v6000_v2 }
  0xd4   : > { %895 = vmatpush1.msra.mxu0 %v4017_v18  ;;  %986 = vmatpush1.msra.mxu1 %v4022_v19 }
  0xd5   : > { %896 = vmatprep.subr.mxu0 %v6000_v2  ;;  %987 = vmatprep.subr.mxu1 %v6000_v2 }
  0xd6   : > { %897 = vmatpush1.msra.mxu0 %v4036_v21  ;;  %988 = vmatpush1.msra.mxu1 %v4041_v22 }
  0xd7   : > { %898 = vmatprep.subr.mxu0 %v6000_v2  ;;  %989 = vmatprep.subr.mxu1 %v6000_v2 }
  0xd8   : > { %899 = vmatpush1.msra.mxu0 %v4051_v23  ;;  %990 = vmatpush1.msra.mxu1 %v4056_v24 }
  0xd9   : > { %900 = vmatprep.subr.mxu0 %v6000_v2  ;;  %991 = vmatprep.subr.mxu1 %v6000_v2 }
  0xda   : > { %901 = vmatpush1.msra.mxu0 %v4067_v25  ;;  %992 = vmatpush1.msra.mxu1 %v4072_v26 }
  0xdb   : > { %902 = vmatprep.subr.mxu0 %v6000_v2  ;;  %993 = vmatprep.subr.mxu1 %v6000_v2 }
  0xdc   : > { %903 = vmatpush1.msra.mxu0 %v4086_v28  ;;  %994 = vmatpush1.msra.mxu1 %v4091_v29 }
  0xdd   : > { %904 = vmatprep.subr.mxu0 %v6000_v2  ;;  %995 = vmatprep.subr.mxu1 %v6000_v2 }
  0xde   : > { %905 = vmatpush1.msra.mxu0 %v4100_v30  ;;  %996 = vmatpush1.msra.mxu1 %v4105_v31 }
  0xdf   : > { %906 = vmatprep.subr.mxu0 %v6000_v2  ;;  %997 = vmatprep.subr.mxu1 %v6000_v2 }
  0xe0   : > { %907 = vmatpush1.msra.mxu0 %v4116_v32  ;;  %998 = vmatpush1.msra.mxu1 %v4121_v33 }
  0xe1   : > { %908 = vmatprep.subr.mxu0 %v6000_v2  ;;  %999 = vmatprep.subr.mxu1 %v6000_v2 }
  0xe2   : > { %909 = vmatpush1.msra.mxu0 %v4134_v35  ;;  %1000 = vmatpush1.msra.mxu1 %v4139_v36 }
  0xe3   : > { %910 = vmatprep.subr.mxu0 %v6000_v2  ;;  %1001 = vmatprep.subr.mxu1 %v6000_v2 }
  0xe4   : > { %911 = vmatpush1.msra.mxu0 %v4148_v37  ;;  %1002 = vmatpush1.msra.mxu1 %v4153_v38 }
  0xe5   : > { %912 = vmatprep.subr.mxu0 %v6000_v2  ;;  %1003 = vmatprep.subr.mxu1 %v6000_v2 }
  0xe6   : > { %913 = vmatpush1.msra.mxu0 %v4162_v39  ;;  %1004 = vmatpush1.msra.mxu1 %v4167_v40 }
  0xe7   : > { %942 = vmatprep.subr.mxu0 %v6000_v2  ;;  %1033 = vmatprep.subr.mxu1 %v6000_v2 }
  0xe8   : > { %2896 = vmatpush2.msk.msra.mxu0 %vm504_vm0, %v4386_v41  ;;  %2916 = vmatpush2.msk.msra.mxu1 %vm504_vm0, %v4391_v42 }
  0xe9   : > { %944 = vmatprep.subr.mxu0 %v6000_v2  ;;  %1035 = vmatprep.subr.mxu1 %v6000_v2 }
  0xea   : > { %945 = vmatpush2.msra.mxu0 %v4190_v43  ;;  %2897 = vmatprep.mubr.msk.f32.mxu0 %vm501_vm3, %v4254_v63 }
  0xeb   : > { %1036 = vmatpush2.msra.mxu1 %v4195_v44  ;;  %2917 = vmatprep.mubr.msk.f32.mxu1 %vm501_vm3, %v4254_v63  ;;  %v4700_v63 = vld [vmem:[%s6107_s3 + $0x38] sm:$0xff] }
  0xec   : > { %947 = vmatmul.mubr.f32.vlgmr.msra.gmra.mxu0 %v858_v47  ;;  %1038 = vmatmul.mubr.f32.vlgmr.msra.gmra.mxu1 %v858_v47  ;;  %v4777_v47 = vld [vmem:[%s6107_s3 + $0x1a8] sm:$0xff] }
  0xed   : > { %1063 = vmatprep.subr.mxu0 %v6000_v2  ;;  %1134 = vmatprep.subr.mxu1 %v6000_v2 }
  0xee   : > { %1064 = vmatpush1.msra.mxu0 %v3907_v0  ;;  %1135 = vmatpush1.msra.mxu1 %v3912_v1  ;;  %v1055_v0 = vpop.permute.xlu1 %1054 }
  0xef   : > { %1065 = vmatprep.subr.mxu0 %v6000_v2  ;;  %1136 = vmatprep.subr.mxu1 %v6000_v2  ;;  %v1060_v1 = vsel %vm481_vm5, %v4276_v9, %v1055_v0  ;;  %v4736_v9 = vld [vmem:[%s6107_s3 + $0xa8] sm:$0xff] }
  0xf0   : > { %1066 = vmatpush1.msra.mxu0 %v3919_v3  ;;  %1137 = vmatpush1.msra.mxu1 %v3924_v4 }
  0xf1   : > { %1067 = vmatprep.subr.mxu0 %v6000_v2  ;;  %1138 = vmatprep.subr.mxu1 %v6000_v2 }
  0xf2   : > { %1068 = vmatpush1.msra.mxu0 %v3936_v5  ;;  %1139 = vmatpush1.msra.mxu1 %v3941_v6 }
  0xf3   : > { %1069 = vmatprep.subr.mxu0 %v6000_v2  ;;  %1140 = vmatprep.subr.mxu1 %v6000_v2 }
  0xf4   : > { %1070 = vmatpush1.msra.mxu0 %v3954_v7  ;;  %1141 = vmatpush1.msra.mxu1 %v3965_v10 }
  0xf5   : > { %1071 = vmatprep.subr.mxu0 %v6000_v2  ;;  %1142 = vmatprep.subr.mxu1 %v6000_v2 }
  0xf6   : > { %1072 = vmatpush1.msra.mxu0 %v3985_v14  ;;  %1143 = vmatpush1.msra.mxu1 %v3990_v15 }
  0xf7   : > { %1073 = vmatprep.subr.mxu0 %v6000_v2  ;;  %1144 = vmatprep.subr.mxu1 %v6000_v2 }
  0xf8   : > { %1074 = vmatpush1.msra.mxu0 %v4001_v16  ;;  %1145 = vmatpush1.msra.mxu1 %v4006_v17  ;;  %v4493_v16 = vld [vmem:[%s6107_s3 + $0xf8] sm:$0xff] }
  0xf9   : > { %1075 = vmatprep.subr.mxu0 %v6000_v2  ;;  %1146 = vmatprep.subr.mxu1 %v6000_v2  ;;  %v4498_v17 = vld [vmem:[%s6107_s3 + $0x78] sm:$0xff] }
  0xfa   : > { %1076 = vmatpush1.msra.mxu0 %v4017_v18  ;;  %1147 = vmatpush1.msra.mxu1 %v4022_v19  ;;  %v4503_v18 = vld [vmem:[%s6107_s3 + $0xf0] sm:$0xff]  ;;  %v4508_v19 = vld [vmem:[%s6108_s2] ss:$0 sm:$0xff] }
  0xfb   : > { %1077 = vmatprep.subr.mxu0 %v6000_v2  ;;  %1148 = vmatprep.subr.mxu1 %v6000_v2 }
  0xfc   : > { %1078 = vmatpush1.msra.mxu0 %v4036_v21  ;;  %1149 = vmatpush1.msra.mxu1 %v4041_v22 }
  0xfd   : > { %1079 = vmatprep.subr.mxu0 %v6000_v2  ;;  %1150 = vmatprep.subr.mxu1 %v6000_v2 }
  0xfe   : > { %1080 = vmatpush1.msra.mxu0 %v4051_v23  ;;  %1151 = vmatpush1.msra.mxu1 %v4056_v24  ;;  %v4514_v23 = vld [vmem:[%s6107_s3 + $0x70] sm:$0xff]  ;;  %v4519_v24 = vld [vmem:[%s6107_s3 + $0x1f8] sm:$0xff] }
  0xff   : > { %1081 = vmatprep.subr.mxu0 %v6000_v2  ;;  %1152 = vmatprep.subr.mxu1 %v6000_v2 }
 0x100   : > { %1082 = vmatpush1.msra.mxu0 %v4067_v25  ;;  %1153 = vmatpush1.msra.mxu1 %v4072_v26  ;;  %v4526_v26 = vld [vmem:[%s6107_s3 + $0xe8] sm:$0xff] }
 0x101   : > { %1083 = vmatprep.subr.mxu0 %v6000_v2  ;;  %1154 = vmatprep.subr.mxu1 %v6000_v2 }
 0x102   : > { %1084 = vmatpush1.msra.mxu0 %v4086_v28  ;;  %1155 = vmatpush1.msra.mxu1 %v4091_v29  ;;  %v4532_v28 = vld [vmem:[%s6107_s3 + $0x178] sm:$0xff]  ;;  %v4538_v29 = vld [vmem:[%s6107_s3 + $0x68] sm:$0xff] }
 0x103   : > { %1085 = vmatprep.subr.mxu0 %v6000_v2  ;;  %1156 = vmatprep.subr.mxu1 %v6000_v2 }
 0x104   : > { %1086 = vmatpush1.msra.mxu0 %v4100_v30  ;;  %1157 = vmatpush1.msra.mxu1 %v4105_v31  ;;  %v4544_v30 = vld [vmem:[%s6107_s3 + $0x1f0] sm:$0xff] }
 0x105   : > { %1087 = vmatprep.subr.mxu0 %v6000_v2  ;;  %1158 = vmatprep.subr.mxu1 %v6000_v2  ;;  %v4549_v31 = vld [vmem:[%s6107_s3 + $0x170] sm:$0xff] }
 0x106   : > { %1088 = vmatpush1.msra.mxu0 %v4116_v32  ;;  %1159 = vmatpush1.msra.mxu1 %v4121_v33  ;;  %v4556_v33 = vld [vmem:[%s6107_s3 + $0xe0] sm:$0xff] }
 0x107   : > { %1089 = vmatprep.subr.mxu0 %v6000_v2  ;;  %1160 = vmatprep.subr.mxu1 %v6000_v2 }
 0x108   : > { %1090 = vmatpush1.msra.mxu0 %v4134_v35  ;;  %1161 = vmatpush1.msra.mxu1 %v4139_v36  ;;  %v4562_v35 = vld [vmem:[%s6107_s3 + $0x1e8] sm:$0xff]  ;;  %v4573_v36 = vld [vmem:[%s6107_s3 + $0x60] sm:$0xff] }
 0x109   : > { %1091 = vmatprep.subr.mxu0 %v6000_v2  ;;  %1162 = vmatprep.subr.mxu1 %v6000_v2 }
 0x10a   : > { %1092 = vmatpush1.msra.mxu0 %v4148_v37  ;;  %1163 = vmatpush1.msra.mxu1 %v4153_v38  ;;  %v4579_v37 = vld [vmem:[%s6107_s3 + $0x168] sm:$0xff]  ;;  %v4584_v38 = vld [vmem:[%s6107_s3 + $0x1e0] sm:$0xff] }
 0x10b   : > { %1093 = vmatprep.subr.mxu0 %v6000_v2  ;;  %1164 = vmatprep.subr.mxu1 %v6000_v2 }
 0x10c   : > { %1094 = vmatpush1.msra.mxu0 %v4162_v39  ;;  %1165 = vmatpush1.msra.mxu1 %v4167_v40  ;;  %v4592_v40 = vld [vmem:[%s6107_s3 + $0xd8] sm:$0xff] }
 0x10d   : > { %1123 = vmatprep.subr.mxu0 %v6000_v2  ;;  %1194 = vmatprep.subr.mxu1 %v6000_v2 }
 0x10e   : > { %2918 = vmatpush2.msk.msra.mxu0 %vm504_vm0, %v4386_v41  ;;  %2920 = vmatpush2.msk.msra.mxu1 %vm504_vm0, %v4391_v42  ;;  %v4765_v41 = vld [vmem:[%s6107_s3 + $0x130] sm:$0xff]  ;;  %v4772_v42 = vld [vmem:[%s6107_s3 + $0x20] sm:$0xff]  ;;  %vm2600_vm0 = vcmask 401408  }
 0x10f   : > { %1125 = vmatprep.subr.mxu0 %v6000_v2  ;;  %1196 = vmatprep.subr.mxu1 %v6000_v2 }
 0x110   : > { %1126 = vmatpush2.msra.mxu0 %v4190_v43  ;;  %2919 = vmatprep.mubr.msk.f32.mxu0 %vm501_vm3, %v1055_v0  ;;  %v4598_v43 = vld [vmem:[%s6107_s3 + $0x160] sm:$0xff] }
 0x111   : > { %1197 = vmatpush2.msra.mxu1 %v4195_v44  ;;  %2921 = vmatprep.mubr.msk.f32.mxu1 %vm501_vm3, %v1055_v0  ;;  %v4604_v44 = vld [vmem:[%s6107_s3 + $0x58] sm:$0xff] }
 0x112   : > { %1128 = vmatmul.mubr.f32.vlgmr.msra.gmra.mxu0 %v1060_v1  ;;  %1199 = vmatmul.mubr.f32.vlgmr.msra.gmra.mxu1 %v1060_v1  ;;  %v4784_v0 = vld [vmem:[%s6107_s3 + $0x98] sm:$0xff]  ;;  %v4789_v1 = vld [vmem:[%s6107_s3 + $0x128] sm:$0xff] }
 0x113   : > { %3045 = vmatprep.subr.mxu0 %v4493_v16  ;;  %3080 = vmatprep.subr.mxu1 %v4519_v24 }
 0x114   : > { %3046 = vmatpush3.msra.mxu0 %v4498_v17  ;;  %3081 = vmatpush3.msra.mxu1 %v4532_v28 }
 0x115   : > { %3047 = vmatprep.subr.mxu0 %v4503_v18  ;;  %3082 = vmatprep.subr.mxu1 %v4544_v30 }
 0x116   : > { %3048 = vmatpush3.msra.mxu0 %v4514_v23  ;;  %3083 = vmatpush3.msra.mxu1 %v4549_v31 }
 0x117   : > { %3049 = vmatprep.subr.mxu0 %v4526_v26  ;;  %3084 = vmatprep.subr.mxu1 %v4562_v35 }
 0x118   : > { %3050 = vmatpush3.msra.mxu0 %v4538_v29  ;;  %3085 = vmatpush3.msra.mxu1 %v4579_v37 }
 0x119   : > { %3051 = vmatprep.subr.mxu0 %v4556_v33  ;;  %3086 = vmatprep.subr.mxu1 %v4584_v38 }
 0x11a   : > { %3052 = vmatpush3.msra.mxu0 %v4573_v36  ;;  %3087 = vmatpush3.msra.mxu1 %v4598_v43 }
 0x11b   : > { %3053 = vmatprep.subr.mxu0 %v4592_v40  ;;  %3088 = vmatprep.subr.mxu1 %v4621_v50 }
 0x11c   : > { %3054 = vmatpush3.msra.mxu0 %v4604_v44  ;;  %3089 = vmatpush3.msra.mxu1 %v4633_v52 }
 0x11d   : > { %3055 = vmatprep.subr.mxu0 %v4615_v49  ;;  %3090 = vmatprep.subr.mxu1 %v4647_v54 }
 0x11e   : > { %3056 = vmatpush3.msra.mxu0 %v4627_v51  ;;  %3091 = vmatpush3.msra.mxu1 %v4667_v58 }
 0x11f   : > { %3057 = vmatprep.subr.mxu0 %v4642_v53  ;;  %3092 = vmatprep.subr.mxu1 %v4679_v60 }
 0x120   : > { %3058 = vmatpush3.msra.mxu0 %v4654_v55  ;;  %3093 = vmatpush3.msra.mxu1 %v4693_v62 }
 0x121   : > { %3059 = vmatprep.subr.mxu0 %v4662_v57  ;;  %3094 = vmatprep.subr.mxu1 %v4705_v11 }
 0x122   : > { %3060 = vmatpush3.msra.mxu0 %v4674_v59  ;;  %3095 = vmatpush3.msra.mxu1 %v4717_v13 }
 0x123   : > { %3061 = vmatprep.subr.mxu0 %v4688_v61  ;;  %3096 = vmatprep.subr.mxu1 %v4729_v27 }
 0x124   : > { %3062 = vmatpush3.msra.mxu0 %v4700_v63  ;;  %3097 = vmatpush3.msra.mxu1 %v4741_v34 }
 0x125   : > { %3063 = vmatprep.subr.mxu0 %v4712_v12  ;;  %3098 = vmatprep.subr.mxu1 %v4753_v8 }
 0x126   : > { %3064 = vmatpush3.msra.mxu0 %v4724_v20  ;;  %3099 = vmatpush3.msra.mxu1 %v4765_v41 }
 0x127   : > { %3065 = vmatprep.subr.mxu0 %v4736_v9  ;;  %3100 = vmatprep.subr.mxu1 %v4777_v47 }
 0x128   : > { %3066 = vmatpush3.msra.mxu0 %v4748_v45  ;;  %3101 = vmatpush3.msra.mxu1 %v4789_v1 }
 0x129   : > { %3067 = vmatprep.subr.mxu0 %v4760_v46 }
 0x12a   : > { %3068 = vmatpush3.msra.mxu0 %v4772_v42 }
 0x12b   : > { %3069 = vmatprep.subr.mxu0 %v4784_v0 }
 0x161   : > { %v574_v3 = vpop.f32.mrf.mxu0  ;;  %v666_v4 = vpop.f32.mrf.mxu1 }
 0x162   : > { %v670_v7 = vmax.f32 %v574_v3, %v666_v4  ;;  %v4796_v3 = vld [vmem:[%s6107_s3 + $0x18] sm:$0xff]  ;;  %v4801_v4 = vld [vmem:[%s6107_s3 + $0x1a0] sm:$0xff] }
 0x163   : > { %v576_v5 = vpop.f32.mrf.mxu0  ;;  %v668_v6 = vpop.f32.mrf.mxu1  ;;  %3070 = vmatpush3.msra.mxu0 %v4796_v3  ;;  %3102 = vmatprep.subr.mxu1 %v4801_v4 }
 0x164   : > { %v4808_v5 = vld [vmem:[%s6107_s3 + $0x90] sm:$0xff]  ;;  %v4813_v6 = vld [vmem:[%s6107_s3 + $0x120] sm:$0xff] }
 0x165   : > { %6109 = vst [vmem:[#allocation9_spill] sm:$0xff] %v4813_v6  ;;  %3071 = vmatprep.subr.mxu0 %v4808_v5  ;;  %3103 = vmatpush3.msra.mxu1 %v4813_v6 }
 0x186   : > { %v756_v10 = vpop.f32.mrf.mxu0  ;;  %v827_v14 = vpop.f32.mrf.mxu1 }
 0x187   : > { %v760_v15 = vmax.f32 %v670_v7, %v756_v10  ;;  %v4820_v7 = vld [vmem:[%s6107_s3 + $0x10] sm:$0xff]  ;;  %v4825_v10 = vld [vmem:[%s6107_s3 + $0x198] sm:$0xff] }
 0x188   : > { %v758_v21 = vpop.f32.mrf.mxu0  ;;  %v829_v22 = vpop.f32.mrf.mxu1  ;;  %6110 = vst [vmem:[#allocation10_spill] sm:$0xff] %v4820_v7  ;;  %6111 = vst [vmem:[#allocation11_spill] sm:$0xff] %v4825_v10  ;;  %3072 = vmatpush3.msra.mxu0 %v4820_v7  ;;  %3104 = vmatprep.subr.mxu1 %v4825_v10  ;;  %v4866_v10 = vld [vmem:[%s6107_s3] sm:$0xff] }
 0x189   : > { %v831_v25 = vmax.f32 %v760_v15, %v827_v14  ;;  %v4832_v14 = vld [vmem:[%s6107_s3 + $0x88] sm:$0xff]  ;;  %v4837_v15 = vld [vmem:[%s6107_s3 + $0x118] sm:$0xff]  ;;  %v4849_v22 = vld [vmem:[%s6107_s3 + $0x190] sm:$0xff]  ;;  %6117 = vst [vmem:[#allocation17_spill] sm:$0xff] %v4866_v10 }
 0x18a   : > { %6112 = vst [vmem:[#allocation12_spill] sm:$0xff] %v4832_v14  ;;  %6113 = vst [vmem:[#allocation13_spill] sm:$0xff] %v4837_v15  ;;  %v4844_v21 = vld [vmem:[%s6107_s3 + $0x8] sm:$0xff]  ;;  %3073 = vmatprep.subr.mxu0 %v4832_v14  ;;  %3105 = vmatpush3.msra.mxu1 %v4837_v15  ;;  %v4871_v14 = vld [vmem:[%s6107_s3 + $0x110] sm:$0xff] }
 0x18b   : > { %v838_v32 = vadd.f32 %v4508_v19, %v831_v25  ;;  %6114 = vst [vmem:[#allocation14_spill] sm:$0xff] %v4844_v21  ;;  %6115 = vst [vmem:[#allocation15_spill] sm:$0xff] %v4849_v22  ;;  %v4856_v25 = vld [vmem:[%s6107_s3 + $0x80] sm:$0xff]  ;;  %3074 = vmatpush3.msra.mxu0 %v4844_v21  ;;  %3106 = vmatprep.subr.mxu1 %v4849_v22  ;;  %v4878_v22 = vld [vmem:[%s6107_s3 + $0x188] sm:$0xff] }
 0x18c   : > { %6116 = vst [vmem:[#allocation16_spill] sm:$0xff] %v4856_v25  ;;  %3075 = vmatprep.subr.mxu0 %v4856_v25  ;;  %6118 = vst [vmem:[#allocation18_spill] sm:$0xff] %v4871_v14  ;;  %3107 = vmatpush3.msra.mxu1 %v4871_v14  ;;  %v4891_v14 = vld [vmem:[%s6107_s3 + $0x180] sm:$0xff] }
 0x18d   : > { %v4586_v39 = vmax.f32 %v838_v32, 0.0  ;;  %3076 = vmatpush3.msra.mxu0 %v4866_v10  ;;  %6119 = vst [vmem:[#allocation19_spill] sm:$0xff] %v4878_v22  ;;  %3108 = vmatprep.subr.mxu1 %v4878_v22  ;;  %6122 = vst [vmem:[#allocation21_spill] sm:$0xff] %v4891_v14  ;;  %v4897_v22 = vld [vmem:[%s6107_s3 + $0x100] sm:$0xff] }
 0x18e   : > { %6123 = vst [vmem:[#allocation22_spill] sm:$0xff] %v4897_v22 }
 0x18f   : > { %841 = vst.msk [vmem:[%s4567_s28] sm:$0x3f] %vm840_vm6, %v4586_v39  ;;  %v5999_v48 = vrot.slane %v4586_v39, 1  ;;  %v5998_v56 = vrot.slane %v4586_v39, 2 }
 0x191   : > { %1215 = vrot.lane.b32.xlu1 %v5999_v48, %s3783_s18 }
 0x195   : > { %1223 = vrot.lane.b32.xlu1 %v5998_v56, %s5997_s26 }
 0x1ac   : > { %v948_v32 = vpop.f32.mrf.mxu0  ;;  %v1039_v56 = vpop.f32.mrf.mxu1 }
 0x1ad   : > { %v1043_v10 = vmax.f32 %v948_v32, %v1039_v56  ;;  %v4903_v56 = vld [vmem:[%s6107_s3 + $0x350] sm:$0xff] }
 0x1ae   : > { %v950_v48 = vpop.f32.mrf.mxu0  ;;  %v1041_v2 = vpop.f32.mrf.mxu1  ;;  %6124 = vst [vmem:[#allocation23_spill] sm:$0xff] %v4903_v56 }
 0x1af   : > { %v6120_v2 = vmov 0.0   ;;  %v4885_v48 = vld [vmem:[%s6107_s3 + $0x108] sm:$0xff] }
 0x1b0   : > { %3425 = vmatprep.subr.mxu0 %v6120_v2  ;;  %6121 = vst [vmem:[#allocation20_spill] sm:$0xff] %v4885_v48  ;;  %3109 = vmatpush3.msra.mxu1 %v4885_v48 }
 0x1b1   : > { %3110 = vmatprep.subr.mxu1 %v4891_v14 }
 0x1b2   : > { %3111 = vmatpush3.msra.mxu1 %v4897_v22  ;;  %v4986_v22 = vld [vmem:[%s6107_s3 + $0x340] sm:$0xff] }
 0x1b3   : > { %3127 = vmatprep.subr.mxu1 %v4903_v56  ;;  %v4958_v56 = vld [vmem:[%s6107_s3 + $0x2d0] sm:$0xff]  ;;  %6134 = vst [vmem:[#allocation30_spill] sm:$0xff] %v4986_v22 }
 0x1b4   : > { %6130 = vst [vmem:[#allocation26_spill] sm:$0xff] %v4958_v56 }
 0x1d2   : > { %v1129_v25 = vpop.f32.mrf.mxu0  ;;  %v1200_v15 = vpop.f32.mrf.mxu1 }
 0x1d3   : > { %v1133_v21 = vmax.f32 %v1043_v10, %v1129_v25 }
 0x1d4   : > { %v1131_v32 = vpop.f32.mrf.mxu0  ;;  %v1202_v48 = vpop.f32.mrf.mxu1 }
 0x1d5   : > { %v1204_v6 = vmax.f32 %v1133_v21, %v1200_v15  ;;  %v4929_v32 = vld [vmem:[%s6107_s3 + $0x250] sm:$0xff] }
 0x1d7   : > { %v1205_v14 = vadd.f32 %v4508_v19, %v1204_v6  ;;  %v6126_v19 = vrot.slane %v4586_v39, 1  ;;  %v6127_v6 = vrot.slane %v4586_v39, 2 }
 0x1d9   : > { %v4907_v7 = vmax.f32 %v1205_v14, 0.0 }
 0x1db   : > { %2922 = vst.msk [vmem:[%s4567_s28 + $0x8] sm:$0x3f] %vm840_vm6, %v4907_v7  ;;  %1210 = vrot.lane.b32.xlu0 %v4907_v7, %s3785_s15  ;;  %v1218_v10 = vrot.slane %v4907_v7, 1  ;;  %v1817_v25 = vrot.slane %v4907_v7, 2 }
 0x1dd   : > { %1811 = vrot.lane.b32.xlu1 %v1218_v10, %s3783_s18 }
 0x1df   : > { %1219 = vrot.lane.b32.xlu0 %v1218_v10, %s3786_s16  ;;  %v4935_v10 = vld [vmem:[%s6107_s3 + $0x248] sm:$0xff] }
 0x1e0   : > { %6128 = vst [vmem:[#allocation24_spill] sm:$0xff] %v4935_v10 }
 0x1e1   : > { %1818 = vrot.lane.b32.xlu1 %v1817_v25, %s6125_s17 }
 0x1e3   : > { %1808 = vrot.lane.b32.xlu0 %v6126_v19, %s3785_s15  ;;  %s5919_s15 = sand.u32 1, %s3769_s22  }
 0x1e4   : > { %s422_s29 = scalar_lea.vmem [#allocation2], %s5919_s15  ;;  %s2693_s26 = scalar_lea.sflag [#allocation3], %s5919_s15 }
 0x1e5   : > { %s2715_s19 = sshll.u32 %s422_s29, 4  ;;  %s2716_s19 = int_to_ptr.vmem [resolvable:$true] %s2715_s19 }
 0x1e6   : > { %s3687_s20 = scalar_lea.vmem %s2716_s19, 16 }
 0x1e7   : > { %1814 = vrot.lane.b32.xlu0 %v6127_v6, %s3786_s16  ;;  %s6095_s16 = sshll.u32 %s3876_s25, 4  ;;  %p3688_p11 = scmp.ne.s32.totalorder %s2716_s19, %s3687_s20 }
 0x1e8   : > { %s2713_s28 = scalar_lea.hbm %s5991_s11, %s6095_s16 }
 0x1e9   : > { %p3689_p12 = pnand %p3688_p11, %p3893_p5 }
 0x1eb   : > { %p3690_p13 = pneg %p3689_p12 }
 0x203   : > { %v1216_v14 = vpop.permute.xlu1 %1215 }
 0x207   : > { %v4937_v25 = vpop.permute.xlu1 %1223 }
 0x24d   : > { %v1211_v15 = vpop.permute.xlu0 %1210 }
 0x24e   : > { %v4923_v21 = vsel %vm1226_vm7, %v4586_v39, %v1211_v15  ;;  %v1228_v48 = vsel %vm481_vm5, %v1211_v15, %v1216_v14  ;;  %v4953_v15 = vld [vmem:[%s6107_s3 + $0x240] sm:$0xff] }
 0x24f   : > { %1375 = vmatprep.mubr.f32.mxu0 %v1228_v48  ;;  %6129 = vst [vmem:[#allocation25_spill] sm:$0xff] %v4953_v15 }
 0x250   : > { %1376 = vmatmul.mubr.f32.vlgmr.msra.gmra.mxu0 %v4923_v21 }
 0x251   : > { %3426 = vmatpush3.msra.mxu0 %v4929_v32  ;;  %v1220_v39 = vpop.permute.xlu0 %1219  ;;  %3447 = vmatprep.mubr.msk.f32.mxu0 %vm3787_vm10, %v6120_v2 }
 0x252   : > { %v4943_v19 = vsel %vm1229_vm8, %v1216_v14, %v1220_v39  ;;  %3427 = vmatprep.subr.mxu0 %v6120_v2  ;;  %v4948_v6 = vsel %vm1231_vm9, %v1220_v39, %v4937_v25  ;;  %v4965_v14 = vld [vmem:[%s6107_s3 + $0x348] sm:$0xff]  ;;  %v4972_v39 = vld [vmem:[%s6107_s3 + $0x238] sm:$0xff] }
 0x253   : > { %3428 = vmatpush3.msra.mxu0 %v4935_v10  ;;  %1445 = vmatprep.mubr.f32.mxu1 %v4948_v6  ;;  %6131 = vst [vmem:[#allocation27_spill] sm:$0xff] %v4965_v14  ;;  %6132 = vst [vmem:[#allocation28_spill] sm:$0xff] %v4972_v39  ;;  %v4979_v10 = vld [vmem:[%s6107_s3 + $0x2c8] sm:$0xff] }
 0x254   : > { %3429 = vmatprep.subr.mxu0 %v6120_v2  ;;  %1446 = vmatmul.mubr.f32.vlgmr.msra.gmra.mxu1 %v4943_v19  ;;  %6133 = vst [vmem:[#allocation29_spill] sm:$0xff] %v4979_v10 }
 0x255   : > { %3430 = vmatpush3.msra.mxu0 %v4953_v15  ;;  %3128 = vmatpush3.msra.mxu1 %v4958_v56  ;;  %v4991_v15 = vld [vmem:[%s6107_s3 + $0x230] sm:$0xff]  ;;  %v4997_v56 = vld [vmem:[%s6107_s3 + $0x2c0] sm:$0xff] }
 0x256   : > { %3431 = vmatprep.subr.mxu0 %v6120_v2  ;;  %3129 = vmatprep.subr.mxu1 %v4965_v14  ;;  %6135 = vst [vmem:[#allocation31_spill] sm:$0xff] %v4991_v15  ;;  %6136 = vst [vmem:[#allocation32_spill] sm:$0xff] %v4997_v56  ;;  %v5004_v14 = vld [vmem:[%s6107_s3 + $0x338] sm:$0xff] }
 0x257   : > { %1661 = vmatprep.mubr.f32.mxu1 %v1228_v48  ;;  %3432 = vmatpush3.msra.mxu0 %v4972_v39  ;;  %6137 = vst [vmem:[#allocation33_spill] sm:$0xff] %v5004_v14  ;;  %v5009_v48 = vld [vmem:[%s6107_s3 + $0x228] sm:$0xff]  ;;  %v5023_v39 = vld [vmem:[%s6107_s3 + $0x330] sm:$0xff] }
 0x258   : > { %3130 = vmatpush3.msra.mxu1 %v4979_v10  ;;  %3433 = vmatprep.subr.mxu0 %v6120_v2  ;;  %6138 = vst [vmem:[#allocation34_spill] sm:$0xff] %v5009_v48  ;;  %v5016_v10 = vld [vmem:[%s6107_s3 + $0x2b8] sm:$0xff]  ;;  %6140 = vst [vmem:[#allocation36_spill] sm:$0xff] %v5023_v39 }
 0x259   : > { %3131 = vmatprep.subr.mxu1 %v4986_v22  ;;  %3434 = vmatpush3.msra.mxu0 %v4991_v15  ;;  %6139 = vst [vmem:[#allocation35_spill] sm:$0xff] %v5016_v10  ;;  %v5028_v22 = vld [vmem:[%s6107_s3 + $0x220] sm:$0xff]  ;;  %v5042_v15 = vld [vmem:[%s6107_s3 + $0x328] sm:$0xff] }
 0x25a   : > { %3132 = vmatpush3.msra.mxu1 %v4997_v56  ;;  %3435 = vmatprep.subr.mxu0 %v6120_v2  ;;  %6141 = vst [vmem:[#allocation37_spill] sm:$0xff] %v5028_v22  ;;  %v5035_v56 = vld [vmem:[%s6107_s3 + $0x2b0] sm:$0xff]  ;;  %6143 = vst [vmem:[#allocation39_spill] sm:$0xff] %v5042_v15 }
 0x25b   : > { %3133 = vmatprep.subr.mxu1 %v5004_v14  ;;  %3436 = vmatpush3.msra.mxu0 %v5009_v48  ;;  %6142 = vst [vmem:[#allocation38_spill] sm:$0xff] %v5035_v56  ;;  %v5047_v14 = vld [vmem:[%s6107_s3 + $0x218] sm:$0xff]  ;;  %v5061_v48 = vld [vmem:[%s6107_s3 + $0x320] sm:$0xff] }
 0x25c   : > { %3134 = vmatpush3.msra.mxu1 %v5016_v10  ;;  %3437 = vmatprep.subr.mxu0 %v6120_v2  ;;  %6144 = vst [vmem:[#allocation40_spill] sm:$0xff] %v5047_v14  ;;  %v5054_v10 = vld [vmem:[%s6107_s3 + $0x2a8] sm:$0xff]  ;;  %6146 = vst [vmem:[#allocation42_spill] sm:$0xff] %v5061_v48 }
 0x25d   : > { %3135 = vmatprep.subr.mxu1 %v5023_v39  ;;  %3438 = vmatpush3.msra.mxu0 %v5028_v22  ;;  %6145 = vst [vmem:[#allocation41_spill] sm:$0xff] %v5054_v10  ;;  %v5066_v39 = vld [vmem:[%s6107_s3 + $0x210] sm:$0xff]  ;;  %v5080_v22 = vld [vmem:[%s6107_s3 + $0x318] sm:$0xff] }
 0x25e   : > { %3136 = vmatpush3.msra.mxu1 %v5035_v56  ;;  %3439 = vmatprep.subr.mxu0 %v6120_v2  ;;  %6147 = vst [vmem:[#allocation43_spill] sm:$0xff] %v5066_v39  ;;  %v5073_v56 = vld [vmem:[%s6107_s3 + $0x2a0] sm:$0xff]  ;;  %6149 = vst [vmem:[#allocation45_spill] sm:$0xff] %v5080_v22 }
 0x25f   : > { %3137 = vmatprep.subr.mxu1 %v5042_v15  ;;  %3440 = vmatpush3.msra.mxu0 %v5047_v14  ;;  %6148 = vst [vmem:[#allocation44_spill] sm:$0xff] %v5073_v56  ;;  %v5085_v15 = vld [vmem:[%s6107_s3 + $0x208] sm:$0xff]  ;;  %v5099_v14 = vld [vmem:[%s6107_s3 + $0x310] sm:$0xff] }
 0x260   : > { %3138 = vmatpush3.msra.mxu1 %v5054_v10  ;;  %3441 = vmatprep.subr.mxu0 %v6120_v2  ;;  %6150 = vst [vmem:[#allocation46_spill] sm:$0xff] %v5085_v15  ;;  %v5092_v10 = vld [vmem:[%s6107_s3 + $0x298] sm:$0xff]  ;;  %6152 = vst [vmem:[#allocation48_spill] sm:$0xff] %v5099_v14 }
 0x261   : > { %3139 = vmatprep.subr.mxu1 %v5061_v48  ;;  %3442 = vmatpush3.msra.mxu0 %v5066_v39  ;;  %6151 = vst [vmem:[#allocation47_spill] sm:$0xff] %v5092_v10  ;;  %v5104_v48 = vld [vmem:[%s6107_s3 + $0x200] sm:$0xff]  ;;  %v5118_v39 = vld [vmem:[%s6107_s3 + $0x308] sm:$0xff] }
 0x262   : > { %3140 = vmatpush3.msra.mxu1 %v5073_v56  ;;  %3443 = vmatprep.subr.mxu0 %v6120_v2  ;;  %6153 = vst [vmem:[#allocation49_spill] sm:$0xff] %v5104_v48  ;;  %v5111_v56 = vld [vmem:[%s6107_s3 + $0x290] sm:$0xff]  ;;  %6155 = vst [vmem:[#allocation51_spill] sm:$0xff] %v5118_v39 }
 0x263   : > { %3141 = vmatprep.subr.mxu1 %v5080_v22  ;;  %3444 = vmatpush3.msra.mxu0 %v5085_v15  ;;  %6154 = vst [vmem:[#allocation50_spill] sm:$0xff] %v5111_v56  ;;  %v5123_v22 = vld [vmem:[%s6107_s3 + $0x450] sm:$0xff] }
 0x264   : > { %3142 = vmatpush3.msra.mxu1 %v5092_v10  ;;  %3445 = vmatprep.subr.mxu0 %v6120_v2  ;;  %6156 = vst [vmem:[#allocation52_spill] sm:$0xff] %v5123_v22  ;;  %v5130_v10 = vld [vmem:[%s6107_s3 + $0x288] sm:$0xff]  ;;  %v5135_v15 = vld [vmem:[%s6107_s3 + $0x3d0] sm:$0xff] }
 0x265   : > { %3143 = vmatprep.subr.mxu1 %v5099_v14  ;;  %3446 = vmatpush3.msra.mxu0 %v5104_v48  ;;  %6157 = vst [vmem:[#allocation53_spill] sm:$0xff] %v5130_v10  ;;  %6158 = vst [vmem:[#allocation54_spill] sm:$0xff] %v5135_v15  ;;  %v5143_v14 = vld [vmem:[%s6107_s3 + $0x300] sm:$0xff]  ;;  %v5150_v48 = vld [vmem:[%s6107_s3 + $0x448] sm:$0xff] }
 0x266   : > { %3144 = vmatpush3.msra.mxu1 %v5111_v56  ;;  %3448 = vmatmul.mubr.msk.f32.vlgmr.msra.gmra.mxu0 %vm1308_vm11, %v4937_v25  ;;  %6159 = vst [vmem:[#allocation55_spill] sm:$0xff] %v5143_v14  ;;  %6160 = vst [vmem:[#allocation56_spill] sm:$0xff] %v5150_v48  ;;  %v5155_v56 = vld [vmem:[%s6107_s3 + $0x280] sm:$0xff] }
 0x267   : > { %3145 = vmatprep.subr.mxu1 %v5118_v39  ;;  %3162 = vmatprep.subr.mxu0 %v5123_v22  ;;  %6161 = vst [vmem:[#allocation57_spill] sm:$0xff] %v5155_v56  ;;  %v5162_v39 = vld [vmem:[%s6107_s3 + $0x3c8] sm:$0xff]  ;;  %v5167_v22 = vld [vmem:[%s6107_s3 + $0x2f8] sm:$0xff] }
 0x268   : > { %3146 = vmatpush3.msra.mxu1 %v5130_v10  ;;  %3163 = vmatpush3.msra.mxu0 %v5135_v15  ;;  %6162 = vst [vmem:[#allocation58_spill] sm:$0xff] %v5162_v39  ;;  %6163 = vst [vmem:[#allocation59_spill] sm:$0xff] %v5167_v22  ;;  %v5174_v10 = vld [vmem:[%s6107_s3 + $0x440] sm:$0xff]  ;;  %v5179_v15 = vld [vmem:[%s6107_s3 + $0x278] sm:$0xff] }
 0x269   : > { %1731 = vmatprep.mubr.f32.mxu0 %v4948_v6  ;;  %3147 = vmatprep.subr.mxu1 %v5143_v14  ;;  %6164 = vst [vmem:[#allocation60_spill] sm:$0xff] %v5174_v10  ;;  %6165 = vst [vmem:[#allocation61_spill] sm:$0xff] %v5179_v15  ;;  %v5186_v6 = vld [vmem:[%s6107_s3 + $0x3c0] sm:$0xff]  ;;  %v5191_v14 = vld [vmem:[%s6107_s3 + $0x2f0] sm:$0xff] }
 0x26a   : > { %3164 = vmatprep.subr.mxu0 %v5150_v48  ;;  %3148 = vmatpush3.msra.mxu1 %v5155_v56  ;;  %6166 = vst [vmem:[#allocation62_spill] sm:$0xff] %v5186_v6  ;;  %6167 = vst [vmem:[#allocation63_spill] sm:$0xff] %v5191_v14  ;;  %v5198_v48 = vld [vmem:[%s6107_s3 + $0x438] sm:$0xff]  ;;  %v5203_v56 = vld [vmem:[%s6107_s3 + $0x270] sm:$0xff] }
 0x26b   : > { %3165 = vmatpush3.msra.mxu0 %v5162_v39  ;;  %3149 = vmatprep.subr.mxu1 %v5167_v22  ;;  %6168 = vst [vmem:[#allocation64_spill] sm:$0xff] %v5198_v48  ;;  %6169 = vst [vmem:[#allocation65_spill] sm:$0xff] %v5203_v56  ;;  %v5210_v39 = vld [vmem:[%s6107_s3 + $0x3b8] sm:$0xff]  ;;  %v5215_v22 = vld [vmem:[%s6107_s3 + $0x2e8] sm:$0xff] }
 0x26c   : > { %3166 = vmatprep.subr.mxu0 %v5174_v10  ;;  %3150 = vmatpush3.msra.mxu1 %v5179_v15  ;;  %6170 = vst [vmem:[#allocation66_spill] sm:$0xff] %v5210_v39  ;;  %6171 = vst [vmem:[#allocation67_spill] sm:$0xff] %v5215_v22  ;;  %v5222_v10 = vld [vmem:[%s6107_s3 + $0x430] sm:$0xff]  ;;  %v5227_v15 = vld [vmem:[%s6107_s3 + $0x268] sm:$0xff] }
 0x26d   : > { %3167 = vmatpush3.msra.mxu0 %v5186_v6  ;;  %3151 = vmatprep.subr.mxu1 %v5191_v14  ;;  %6172 = vst [vmem:[#allocation68_spill] sm:$0xff] %v5222_v10  ;;  %6173 = vst [vmem:[#allocation69_spill] sm:$0xff] %v5227_v15  ;;  %v5234_v6 = vld [vmem:[%s6107_s3 + $0x3b0] sm:$0xff]  ;;  %v5239_v14 = vld [vmem:[%s6107_s3 + $0x2e0] sm:$0xff] }
 0x26e   : > { %3168 = vmatprep.subr.mxu0 %v5198_v48  ;;  %3152 = vmatpush3.msra.mxu1 %v5203_v56  ;;  %6174 = vst [vmem:[#allocation70_spill] sm:$0xff] %v5234_v6  ;;  %6175 = vst [vmem:[#allocation71_spill] sm:$0xff] %v5239_v14  ;;  %v5246_v48 = vld [vmem:[%s6107_s3 + $0x428] sm:$0xff]  ;;  %v5251_v56 = vld [vmem:[%s6107_s3 + $0x260] sm:$0xff] }
 0x26f   : > { %3169 = vmatpush3.msra.mxu0 %v5210_v39  ;;  %3153 = vmatprep.subr.mxu1 %v5215_v22  ;;  %6176 = vst [vmem:[#allocation72_spill] sm:$0xff] %v5251_v56  ;;  %v5258_v39 = vld [vmem:[%s6107_s3 + $0x3a8] sm:$0xff]  ;;  %v5263_v22 = vld [vmem:[%s6107_s3 + $0x2d8] sm:$0xff] }
 0x270   : > { %3170 = vmatprep.subr.mxu0 %v5222_v10  ;;  %3154 = vmatpush3.msra.mxu1 %v5227_v15  ;;  %6177 = vst [vmem:[#allocation73_spill] sm:$0xff] %v5258_v39  ;;  %6178 = vst [vmem:[#allocation74_spill] sm:$0xff] %v5263_v22  ;;  %v5270_v10 = vld [vmem:[%s6107_s3 + $0x420] sm:$0xff]  ;;  %v5275_v15 = vld [vmem:[%s6107_s3 + $0x258] sm:$0xff] }
 0x271   : > { %3171 = vmatpush3.msra.mxu0 %v5234_v6  ;;  %3155 = vmatprep.subr.mxu1 %v5239_v14  ;;  %6179 = vst [vmem:[#allocation75_spill] sm:$0xff] %v5270_v10  ;;  %6180 = vst [vmem:[#allocation76_spill] sm:$0xff] %v5275_v15  ;;  %v5282_v6 = vld [vmem:[%s6107_s3 + $0x3a0] sm:$0xff]  ;;  %v5289_v14 = vld [vmem:[%s6107_s3 + $0x418] sm:$0xff] }
 0x272   : > { %3172 = vmatprep.subr.mxu0 %v5246_v48  ;;  %3156 = vmatpush3.msra.mxu1 %v5251_v56  ;;  %6181 = vst [vmem:[#allocation77_spill] sm:$0xff] %v5282_v6  ;;  %6182 = vst [vmem:[#allocation78_spill] sm:$0xff] %v5289_v14  ;;  %v5296_v56 = vld [vmem:[%s6107_s3 + $0x398] sm:$0xff] }
 0x273   : > { %3173 = vmatpush3.msra.mxu0 %v5258_v39  ;;  %3157 = vmatprep.subr.mxu1 %v5263_v22  ;;  %6183 = vst [vmem:[#allocation79_spill] sm:$0xff] %v5296_v56  ;;  %v5301_v39 = vld [vmem:[%s6107_s3 + $0x4a8] sm:$0xff]  ;;  %v5468_v22 = vpop.permute.xlu1 %1811 }
 0x274   : > { %3174 = vmatprep.subr.mxu0 %v5270_v10  ;;  %3158 = vmatpush3.msra.mxu1 %v5275_v15  ;;  %6184 = vst [vmem:[#allocation80_spill] sm:$0xff] %v5301_v39  ;;  %v5308_v10 = vld [vmem:[%s6107_s3 + $0x410] sm:$0xff] }
 0x275   : > { %3175 = vmatpush3.msra.mxu0 %v5282_v6  ;;  %1662 = vmatmul.mubr.f32.vlgmr.msra.gmra.mxu1 %v4923_v21  ;;  %6185 = vst [vmem:[#allocation81_spill] sm:$0xff] %v5308_v10  ;;  %v5315_v15 = vld [vmem:[%s6107_s3 + $0x390] sm:$0xff]  ;;  %v5320_v6 = vld [vmem:[%s6107_s3 + $0x4a0] sm:$0xff]  ;;  %v5327_v21 = vld [vmem:[%s6107_s3 + $0x408] sm:$0xff] }
 0x276   : > { %3176 = vmatprep.subr.mxu0 %v5289_v14  ;;  %3450 = vmatprep.subr.mxu1 %v6120_v2  ;;  %6186 = vst [vmem:[#allocation82_spill] sm:$0xff] %v5315_v15  ;;  %6187 = vst [vmem:[#allocation83_spill] sm:$0xff] %v5320_v6  ;;  %v5334_v14 = vld [vmem:[%s6107_s3 + $0x388] sm:$0xff] }
 0x277   : > { %3177 = vmatpush3.msra.mxu0 %v5296_v56  ;;  %3451 = vmatpush3.msra.mxu1 %v5301_v39  ;;  %6188 = vst [vmem:[#allocation84_spill] sm:$0xff] %v5327_v21  ;;  %6189 = vst [vmem:[#allocation85_spill] sm:$0xff] %v5334_v14  ;;  %v5339_v56 = vld [vmem:[%s6107_s3 + $0x498] sm:$0xff]  ;;  %v5353_v39 = vld [vmem:[%s6107_s3 + $0x380] sm:$0xff] }
 0x278   : > { %3178 = vmatprep.subr.mxu0 %v5308_v10  ;;  %3452 = vmatprep.subr.mxu1 %v6120_v2  ;;  %6190 = vst [vmem:[#allocation86_spill] sm:$0xff] %v5339_v56  ;;  %v5346_v10 = vld [vmem:[%s6107_s3 + $0x400] sm:$0xff]  ;;  %6192 = vst [vmem:[#allocation88_spill] sm:$0xff] %v5353_v39 }
 0x279   : > { %3179 = vmatpush3.msra.mxu0 %v5315_v15  ;;  %3453 = vmatpush3.msra.mxu1 %v5320_v6  ;;  %6191 = vst [vmem:[#allocation87_spill] sm:$0xff] %v5346_v10  ;;  %v5358_v15 = vld [vmem:[%s6107_s3 + $0x490] sm:$0xff]  ;;  %v5372_v6 = vld [vmem:[%s6107_s3 + $0x378] sm:$0xff] }
 0x27a   : > { %3180 = vmatprep.subr.mxu0 %v5327_v21  ;;  %3454 = vmatprep.subr.mxu1 %v6120_v2  ;;  %6193 = vst [vmem:[#allocation89_spill] sm:$0xff] %v5358_v15  ;;  %v5365_v21 = vld [vmem:[%s6107_s3 + $0x3f8] sm:$0xff]  ;;  %6195 = vst [vmem:[#allocation91_spill] sm:$0xff] %v5372_v6 }
 0x27b   : > { %3181 = vmatpush3.msra.mxu0 %v5334_v14  ;;  %3455 = vmatpush3.msra.mxu1 %v5339_v56  ;;  %6194 = vst [vmem:[#allocation90_spill] sm:$0xff] %v5365_v21  ;;  %v5377_v14 = vld [vmem:[%s6107_s3 + $0x488] sm:$0xff]  ;;  %v5391_v56 = vld [vmem:[%s6107_s3 + $0x370] sm:$0xff] }
 0x27c   : > { %3182 = vmatprep.subr.mxu0 %v5346_v10  ;;  %3456 = vmatprep.subr.mxu1 %v6120_v2  ;;  %6196 = vst [vmem:[#allocation92_spill] sm:$0xff] %v5377_v14  ;;  %v5384_v10 = vld [vmem:[%s6107_s3 + $0x3f0] sm:$0xff]  ;;  %6198 = vst [vmem:[#allocation94_spill] sm:$0xff] %v5391_v56 }
 0x27d   : > { %3183 = vmatpush3.msra.mxu0 %v5353_v39  ;;  %3457 = vmatpush3.msra.mxu1 %v5358_v15  ;;  %6197 = vst [vmem:[#allocation93_spill] sm:$0xff] %v5384_v10  ;;  %v5396_v39 = vld [vmem:[%s6107_s3 + $0x480] sm:$0xff]  ;;  %v5410_v15 = vld [vmem:[%s6107_s3 + $0x368] sm:$0xff] }
 0x27e   : > { %3184 = vmatprep.subr.mxu0 %v5365_v21  ;;  %3458 = vmatprep.subr.mxu1 %v6120_v2  ;;  %6199 = vst [vmem:[#allocation95_spill] sm:$0xff] %v5396_v39  ;;  %v5403_v21 = vld [vmem:[%s6107_s3 + $0x3e8] sm:$0xff]  ;;  %6201 = vst [vmem:[#allocation97_spill] sm:$0xff] %v5410_v15 }
 0x27f   : > { %3185 = vmatpush3.msra.mxu0 %v5372_v6  ;;  %3459 = vmatpush3.msra.mxu1 %v5377_v14  ;;  %6200 = vst [vmem:[#allocation96_spill] sm:$0xff] %v5403_v21  ;;  %v5415_v6 = vld [vmem:[%s6107_s3 + $0x478] sm:$0xff]  ;;  %v5429_v14 = vld [vmem:[%s6107_s3 + $0x360] sm:$0xff] }
 0x280   : > { %3186 = vmatprep.subr.mxu0 %v5384_v10  ;;  %3460 = vmatprep.subr.mxu1 %v6120_v2  ;;  %6202 = vst [vmem:[#allocation98_spill] sm:$0xff] %v5415_v6  ;;  %v5422_v10 = vld [vmem:[%s6107_s3 + $0x3e0] sm:$0xff] }
 0x281   : > { %3187 = vmatpush3.msra.mxu0 %v5391_v56  ;;  %3461 = vmatpush3.msra.mxu1 %v5396_v39  ;;  %6203 = vst [vmem:[#allocation99_spill] sm:$0xff] %v5422_v10  ;;  %v5434_v56 = vld [vmem:[%s6107_s3 + $0x470] sm:$0xff]  ;;  %v5448_v39 = vld [vmem:[%s6107_s3 + $0x358] sm:$0xff] }
 0x282   : > { %3188 = vmatprep.subr.mxu0 %v5403_v21  ;;  %3462 = vmatprep.subr.mxu1 %v6120_v2  ;;  %v5441_v21 = vld [vmem:[%s6107_s3 + $0x3d8] sm:$0xff]  ;;  %6205 = vst [vmem:[#allocation101_spill] sm:$0xff] %v5448_v39 }
 0x283   : > { %3189 = vmatpush3.msra.mxu0 %v5410_v15  ;;  %3463 = vmatpush3.msra.mxu1 %v5415_v6  ;;  %6204 = vst [vmem:[#allocation100_spill] sm:$0xff] %v5441_v21  ;;  %v5453_v15 = vld [vmem:[%s6107_s3 + $0x468] sm:$0xff]  ;;  %v5457_v6 = vpop.permute.xlu0 %1808 }
 0x284   : > { %3190 = vmatprep.subr.mxu0 %v5422_v10  ;;  %3464 = vmatprep.subr.mxu1 %v6120_v2  ;;  %v5464_v10 = vld [vmem:[%s6107_s3 + $0x460] sm:$0xff] }
 0x285   : > { %3191 = vmatpush3.msra.mxu0 %v5429_v14  ;;  %3465 = vmatpush3.msra.mxu1 %v5434_v56 }
 0x286   : > { %3192 = vmatprep.subr.mxu0 %v5441_v21  ;;  %3466 = vmatprep.subr.mxu1 %v6120_v2  ;;  %v5477_v21 = vsel %vm481_vm5, %v5457_v6, %v5468_v22 }
 0x287   : > { %3193 = vmatpush3.msra.mxu0 %v5448_v39  ;;  %3467 = vmatpush3.msra.mxu1 %v5453_v15  ;;  %v5482_v39 = vld [vmem:[%s6107_s3 + $0x458] sm:$0xff] }
 0x288   : > { %1732 = vmatmul.mubr.f32.vlgmr.msra.gmra.mxu0 %v4943_v19  ;;  %3468 = vmatprep.subr.mxu1 %v6120_v2  ;;  %v5496_v19 = vpop.permute.xlu1 %1818 }
 0x289   : > { %3209 = vmatprep.subr.mxu0 %v4493_v16  ;;  %3469 = vmatpush3.msra.mxu1 %v5464_v10  ;;  %v5488_v16 = vpop.permute.xlu0 %1814 }
 0x28a   : > { %3210 = vmatpush3.msra.mxu0 %v4498_v17  ;;  %1891 = vmatprep.mubr.f32.mxu0 %v5477_v21  ;;  %v5505_v17 = vsel %vm1231_vm9, %v5488_v16, %v5496_v19 }
 0x28b   : > { %3470 = vmatprep.subr.mxu1 %v6120_v2  ;;  %3211 = vmatprep.subr.mxu0 %v4503_v18  ;;  %v6206_v18 = vld [vmem:[#allocation10_spill] sm:$0xff] }
 0x28c   : > { %3471 = vmatpush3.msra.mxu1 %v5482_v39  ;;  %3472 = vmatprep.mubr.msk.f32.mxu1 %vm3787_vm10, %v6120_v2 }
 0x28d   : > { %3212 = vmatpush3.msra.mxu0 %v4514_v23  ;;  %3473 = vmatmul.mubr.msk.f32.vlgmr.msra.gmra.mxu1 %vm1308_vm11, %v4937_v25  ;;  %v6207_v23 = vld [vmem:[#allocation9_spill] sm:$0xff]  ;;  %v6255_v25 = vld [vmem:[#allocation58_spill] sm:$0xff] }
 0x28e   : > { %3213 = vmatprep.subr.mxu0 %v4526_v26  ;;  %3244 = vmatprep.subr.mxu1 %v4519_v24  ;;  %v6208_v24 = vld [vmem:[#allocation12_spill] sm:$0xff]  ;;  %v6209_v26 = vld [vmem:[#allocation11_spill] sm:$0xff] }
 0x28f   : > { %3214 = vmatpush3.msra.mxu0 %v4538_v29  ;;  %3245 = vmatpush3.msra.mxu1 %v4532_v28  ;;  %v6210_v28 = vld [vmem:[#allocation14_spill] sm:$0xff]  ;;  %v6211_v29 = vld [vmem:[#allocation13_spill] sm:$0xff] }
 0x290   : > { %1961 = vmatprep.mubr.f32.mxu1 %v5505_v17  ;;  %3215 = vmatprep.subr.mxu0 %v4556_v33  ;;  %v6213_v33 = vld [vmem:[#allocation15_spill] sm:$0xff] }
 0x291   : > { %3246 = vmatprep.subr.mxu1 %v4544_v30  ;;  %3216 = vmatpush3.msra.mxu0 %v4573_v36  ;;  %v6212_v30 = vld [vmem:[#allocation16_spill] sm:$0xff]  ;;  %v6215_v36 = vld [vmem:[#allocation18_spill] sm:$0xff] }
 0x292   : > { %3247 = vmatpush3.msra.mxu1 %v4549_v31  ;;  %3217 = vmatprep.subr.mxu0 %v4592_v40  ;;  %v5560_v31 = vsel %vm1226_vm7, %v4907_v7, %v5457_v6  ;;  %v6218_v40 = vld [vmem:[#allocation21_spill] sm:$0xff]  ;;  %v6252_v7 = vld [vmem:[#allocation55_spill] sm:$0xff] }
 0x293   : > { %3248 = vmatprep.subr.mxu1 %v4562_v35  ;;  %3218 = vmatpush3.msra.mxu0 %v4604_v44  ;;  %v6214_v35 = vld [vmem:[#allocation17_spill] sm:$0xff]  ;;  %v6219_v44 = vld [vmem:[#allocation22_spill] sm:$0xff]  ;;  %v6256_v6 = vld [vmem:[#allocation59_spill] sm:$0xff] }
 0x294   : > { %3249 = vmatpush3.msra.mxu1 %v4579_v37  ;;  %3219 = vmatprep.subr.mxu0 %v4615_v49  ;;  %v6216_v37 = vld [vmem:[#allocation19_spill] sm:$0xff]  ;;  %v6220_v49 = vld [vmem:[#allocation24_spill] sm:$0xff] }
 0x295   : > { %3250 = vmatprep.subr.mxu1 %v4584_v38  ;;  %3220 = vmatpush3.msra.mxu0 %v4627_v51  ;;  %v6217_v38 = vld [vmem:[#allocation20_spill] sm:$0xff]  ;;  %v6222_v51 = vld [vmem:[#allocation25_spill] sm:$0xff] }
 0x296   : > { %3251 = vmatpush3.msra.mxu1 %v4598_v43  ;;  %3221 = vmatprep.subr.mxu0 %v4642_v53  ;;  %v5575_v43 = vsel %vm1229_vm8, %v5468_v22, %v5488_v16  ;;  %v6224_v53 = vld [vmem:[#allocation27_spill] sm:$0xff]  ;;  %v6253_v22 = vld [vmem:[#allocation56_spill] sm:$0xff]  ;;  %v6258_v16 = vld [vmem:[#allocation61_spill] sm:$0xff] }
 0x297   : > { %3252 = vmatprep.subr.mxu1 %v4621_v50  ;;  %3222 = vmatpush3.msra.mxu0 %v4654_v55  ;;  %v6221_v50 = vld [vmem:[#allocation23_spill] sm:$0xff]  ;;  %v6226_v55 = vld [vmem:[#allocation29_spill] sm:$0xff] }
 0x298   : > { %3253 = vmatpush3.msra.mxu1 %v4633_v52  ;;  %3223 = vmatprep.subr.mxu0 %v4662_v57  ;;  %v6223_v52 = vld [vmem:[#allocation26_spill] sm:$0xff] }
 0x299   : > { %3254 = vmatprep.subr.mxu1 %v4647_v54  ;;  %3224 = vmatpush3.msra.mxu0 %v4674_v59  ;;  %v6225_v54 = vld [vmem:[#allocation28_spill] sm:$0xff]  ;;  %v6227_v57 = vld [vmem:[#allocation30_spill] sm:$0xff] }
 0x29a   : > { %3255 = vmatpush3.msra.mxu1 %v4667_v58  ;;  %3225 = vmatprep.subr.mxu0 %v4688_v61  ;;  %v6228_v58 = vld [vmem:[#allocation31_spill] sm:$0xff]  ;;  %v6229_v59 = vld [vmem:[#allocation32_spill] sm:$0xff]  ;;  %v6231_v61 = vld [vmem:[#allocation34_spill] sm:$0xff] }
 0x29b   : > { %3256 = vmatprep.subr.mxu1 %v4679_v60  ;;  %3226 = vmatpush3.msra.mxu0 %v4700_v63  ;;  %v6230_v60 = vld [vmem:[#allocation33_spill] sm:$0xff]  ;;  %v6233_v63 = vld [vmem:[#allocation36_spill] sm:$0xff] }
 0x29c   : > { %3257 = vmatpush3.msra.mxu1 %v4693_v62  ;;  %3227 = vmatprep.subr.mxu0 %v4712_v12  ;;  %v6232_v62 = vld [vmem:[#allocation35_spill] sm:$0xff]  ;;  %v6235_v12 = vld [vmem:[#allocation38_spill] sm:$0xff] }
 0x29d   : > { %3258 = vmatprep.subr.mxu1 %v4705_v11  ;;  %3228 = vmatpush3.msra.mxu0 %v4724_v20  ;;  %v6234_v11 = vld [vmem:[#allocation37_spill] sm:$0xff]  ;;  %v6237_v20 = vld [vmem:[#allocation40_spill] sm:$0xff] }
 0x29e   : > { %3259 = vmatpush3.msra.mxu1 %v4717_v13  ;;  %3229 = vmatprep.subr.mxu0 %v4736_v9  ;;  %v6236_v13 = vld [vmem:[#allocation39_spill] sm:$0xff]  ;;  %v6239_v9 = vld [vmem:[#allocation42_spill] sm:$0xff] }
 0x29f   : > { %3260 = vmatprep.subr.mxu1 %v4729_v27  ;;  %3230 = vmatpush3.msra.mxu0 %v4748_v45  ;;  %v6238_v27 = vld [vmem:[#allocation41_spill] sm:$0xff]  ;;  %v6241_v45 = vld [vmem:[#allocation44_spill] sm:$0xff] }
 0x2a0   : > { %3261 = vmatpush3.msra.mxu1 %v4741_v34  ;;  %3231 = vmatprep.subr.mxu0 %v4760_v46  ;;  %v6240_v34 = vld [vmem:[#allocation43_spill] sm:$0xff]  ;;  %v6243_v46 = vld [vmem:[#allocation46_spill] sm:$0xff] }
 0x2a1   : > { %3262 = vmatprep.subr.mxu1 %v4753_v8  ;;  %3232 = vmatpush3.msra.mxu0 %v4772_v42  ;;  %v6242_v8 = vld [vmem:[#allocation45_spill] sm:$0xff]  ;;  %v6245_v42 = vld [vmem:[#allocation48_spill] sm:$0xff] }
 0x2a2   : > { %3263 = vmatpush3.msra.mxu1 %v4765_v41  ;;  %3233 = vmatprep.subr.mxu0 %v4784_v0  ;;  %v6244_v41 = vld [vmem:[#allocation47_spill] sm:$0xff]  ;;  %v6247_v0 = vld [vmem:[#allocation50_spill] sm:$0xff] }
 0x2a3   : > { %3264 = vmatprep.subr.mxu1 %v4777_v47  ;;  %3234 = vmatpush3.msra.mxu0 %v4796_v3  ;;  %v6246_v47 = vld [vmem:[#allocation49_spill] sm:$0xff]  ;;  %v6249_v3 = vld [vmem:[#allocation52_spill] sm:$0xff] }
 0x2a4   : > { %3265 = vmatpush3.msra.mxu1 %v4789_v1  ;;  %3235 = vmatprep.subr.mxu0 %v4808_v5  ;;  %v6248_v1 = vld [vmem:[#allocation51_spill] sm:$0xff]  ;;  %v6251_v5 = vld [vmem:[#allocation54_spill] sm:$0xff] }
 0x2a5   : > { %3266 = vmatprep.subr.mxu1 %v4801_v4  ;;  %3236 = vmatpush3.msra.mxu0 %v6206_v18  ;;  %v6250_v4 = vld [vmem:[#allocation53_spill] sm:$0xff]  ;;  %v6259_v18 = vld [vmem:[#allocation62_spill] sm:$0xff] }
 0x2a6   : > { %3267 = vmatpush3.msra.mxu1 %v6207_v23  ;;  %3237 = vmatprep.subr.mxu0 %v6208_v24  ;;  %v6260_v23 = vld [vmem:[#allocation63_spill] sm:$0xff]  ;;  %v6261_v24 = vld [vmem:[#allocation64_spill] sm:$0xff] }
 0x2a7   : > { %3268 = vmatprep.subr.mxu1 %v6209_v26  ;;  %3238 = vmatpush3.msra.mxu0 %v6210_v28  ;;  %v6263_v26 = vld [vmem:[#allocation66_spill] sm:$0xff]  ;;  %v6264_v28 = vld [vmem:[#allocation67_spill] sm:$0xff] }
 0x2a8   : > { %3269 = vmatpush3.msra.mxu1 %v6211_v29  ;;  %3239 = vmatprep.subr.mxu0 %v6212_v30  ;;  %v6265_v29 = vld [vmem:[#allocation68_spill] sm:$0xff]  ;;  %v6266_v30 = vld [vmem:[#allocation69_spill] sm:$0xff] }
 0x2a9   : > { %3270 = vmatprep.subr.mxu1 %v6213_v33  ;;  %3240 = vmatpush3.msra.mxu0 %v6214_v35  ;;  %v6267_v33 = vld [vmem:[#allocation70_spill] sm:$0xff]  ;;  %v6268_v35 = vld [vmem:[#allocation71_spill] sm:$0xff] }
 0x2aa   : > { %3271 = vmatpush3.msra.mxu1 %v6215_v36  ;;  %1892 = vmatmul.mubr.f32.vlgmr.msra.gmra.mxu0 %v5560_v31  ;;  %v6269_v36 = vld [vmem:[#allocation72_spill] sm:$0xff] }
 0x2ab   : > { %3272 = vmatprep.subr.mxu1 %v6216_v37  ;;  %3475 = vmatprep.subr.mxu0 %v6120_v2  ;;  %v6270_v37 = vld [vmem:[#allocation73_spill] sm:$0xff] }
 0x2ac   : > { %3273 = vmatpush3.msra.mxu1 %v6217_v38  ;;  %3476 = vmatpush3.msra.mxu0 %v4929_v32  ;;  %v6254_v32 = vld [vmem:[#allocation57_spill] sm:$0xff]  ;;  %v6271_v38 = vld [vmem:[#allocation74_spill] sm:$0xff] }
 0x2ad   : > { %3274 = vmatprep.subr.mxu1 %v6218_v40  ;;  %3477 = vmatprep.subr.mxu0 %v6120_v2  ;;  %v6272_v40 = vld [vmem:[#allocation75_spill] sm:$0xff] }
 0x2ae   : > { %3275 = vmatpush3.msra.mxu1 %v6219_v44  ;;  %3478 = vmatpush3.msra.mxu0 %v6220_v49  ;;  %v6273_v44 = vld [vmem:[#allocation76_spill] sm:$0xff]  ;;  %v6274_v49 = vld [vmem:[#allocation77_spill] sm:$0xff] }
 0x2af   : > { %1962 = vmatmul.mubr.f32.vlgmr.msra.gmra.mxu1 %v5575_v43  ;;  %3479 = vmatprep.subr.mxu0 %v6120_v2 }
 0x2b0   : > { %3291 = vmatprep.subr.mxu1 %v6221_v50  ;;  %3480 = vmatpush3.msra.mxu0 %v6222_v51  ;;  %v6275_v50 = vld [vmem:[#allocation78_spill] sm:$0xff]  ;;  %v6276_v51 = vld [vmem:[#allocation79_spill] sm:$0xff] }
 0x2b1   : > { %3292 = vmatpush3.msra.mxu1 %v6223_v52  ;;  %2102 = vmatprep.mubr.f32.mxu1 %v5477_v21  ;;  %v6257_v21 = vld [vmem:[#allocation60_spill] sm:$0xff]  ;;  %v6278_v52 = vld [vmem:[#allocation81_spill] sm:$0xff] }
 0x2b2   : > { %3481 = vmatprep.subr.mxu0 %v6120_v2  ;;  %3293 = vmatprep.subr.mxu1 %v6224_v53  ;;  %v6279_v53 = vld [vmem:[#allocation82_spill] sm:$0xff] }
 0x2b3   : > { %3482 = vmatpush3.msra.mxu0 %v6225_v54  ;;  %3294 = vmatpush3.msra.mxu1 %v6226_v55  ;;  %v6280_v54 = vld [vmem:[#allocation83_spill] sm:$0xff]  ;;  %v6281_v55 = vld [vmem:[#allocation84_spill] sm:$0xff] }
 0x2b4   : > { %3483 = vmatprep.subr.mxu0 %v6120_v2  ;;  %3295 = vmatprep.subr.mxu1 %v6227_v57  ;;  %v6283_v57 = vld [vmem:[#allocation86_spill] sm:$0xff] }
 0x2b5   : > { %3484 = vmatpush3.msra.mxu0 %v6228_v58  ;;  %3296 = vmatpush3.msra.mxu1 %v6229_v59  ;;  %v6284_v58 = vld [vmem:[#allocation87_spill] sm:$0xff]  ;;  %v6285_v59 = vld [vmem:[#allocation88_spill] sm:$0xff] }
 0x2b6   : > { %3485 = vmatprep.subr.mxu0 %v6120_v2  ;;  %3297 = vmatprep.subr.mxu1 %v6230_v60  ;;  %v6286_v60 = vld [vmem:[#allocation89_spill] sm:$0xff] }
 0x2b7   : > { %3486 = vmatpush3.msra.mxu0 %v6231_v61  ;;  %3298 = vmatpush3.msra.mxu1 %v6232_v62  ;;  %v6287_v61 = vld [vmem:[#allocation90_spill] sm:$0xff]  ;;  %v6288_v62 = vld [vmem:[#allocation91_spill] sm:$0xff] }
 0x2b8   : > { %3487 = vmatprep.subr.mxu0 %v6120_v2  ;;  %3299 = vmatprep.subr.mxu1 %v6233_v63  ;;  %v6289_v63 = vld [vmem:[#allocation92_spill] sm:$0xff] }
 0x2b9   : > { %3488 = vmatpush3.msra.mxu0 %v6234_v11  ;;  %3300 = vmatpush3.msra.mxu1 %v6235_v12  ;;  %v6290_v11 = vld [vmem:[#allocation93_spill] sm:$0xff]  ;;  %v6291_v12 = vld [vmem:[#allocation94_spill] sm:$0xff] }
 0x2ba   : > { %3489 = vmatprep.subr.mxu0 %v6120_v2  ;;  %3301 = vmatprep.subr.mxu1 %v6236_v13  ;;  %v6292_v13 = vld [vmem:[#allocation95_spill] sm:$0xff] }
 0x2bb   : > { %3490 = vmatpush3.msra.mxu0 %v6237_v20  ;;  %3302 = vmatpush3.msra.mxu1 %v6238_v27  ;;  %v6293_v20 = vld [vmem:[#allocation96_spill] sm:$0xff]  ;;  %v6294_v27 = vld [vmem:[#allocation97_spill] sm:$0xff] }
 0x2bc   : > { %3491 = vmatprep.subr.mxu0 %v6120_v2  ;;  %3303 = vmatprep.subr.mxu1 %v6239_v9  ;;  %v6295_v9 = vld [vmem:[#allocation98_spill] sm:$0xff] }
 0x2bd   : > { %3492 = vmatpush3.msra.mxu0 %v6240_v34  ;;  %3304 = vmatpush3.msra.mxu1 %v6241_v45  ;;  %v6296_v34 = vld [vmem:[#allocation99_spill] sm:$0xff]  ;;  %v6297_v45 = vld [vmem:[#allocation100_spill] sm:$0xff] }
 0x2be   : > { %3493 = vmatprep.subr.mxu0 %v6120_v2  ;;  %3305 = vmatprep.subr.mxu1 %v6242_v8  ;;  %v6298_v8 = vld [vmem:[#allocation101_spill] sm:$0xff] }
 0x2bf   : > { %3494 = vmatpush3.msra.mxu0 %v6243_v46  ;;  %3306 = vmatpush3.msra.mxu1 %v6244_v41  ;;  %v3012_v46 = vld [vmem:[%s5985_s5 + $0x90] sm:$0xff] }
 0x2c0   : > { %3495 = vmatprep.subr.mxu0 %v6120_v2  ;;  %3307 = vmatprep.subr.mxu1 %v6245_v42  ;;  %v2266_v42 = vld [vmem:[%s5985_s5 + $0x38] sm:$0xff] }
 0x2c1   : > { %3496 = vmatpush3.msra.mxu0 %v6246_v47  ;;  %3497 = vmatprep.mubr.msk.f32.mxu0 %vm3787_vm10, %v6120_v2 }
 0x2c2   : > { %3308 = vmatpush3.msra.mxu1 %v6247_v0  ;;  %3498 = vmatmul.mubr.msk.f32.vlgmr.msra.gmra.mxu0 %vm1308_vm11, %v5496_v19 }
 0x2c3   : > { %3309 = vmatprep.subr.mxu1 %v6248_v1  ;;  %3326 = vmatprep.subr.mxu0 %v6249_v3  ;;  %v2265_v1 = vld [vmem:[%s5985_s5 + $0x30] sm:$0xff]  ;;  %v3011_v3 = vld [vmem:[%s5985_s5 + $0x88] sm:$0xff] }
 0x2c4   : > { %3310 = vmatpush3.msra.mxu1 %v6250_v4  ;;  %3327 = vmatpush3.msra.mxu0 %v6251_v5  ;;  %v2264_v5 = vld [vmem:[%s5985_s5 + $0x28] sm:$0xff] }
 0x2c5   : > { %2172 = vmatprep.mubr.f32.mxu0 %v5505_v17  ;;  %3311 = vmatprep.subr.mxu1 %v6252_v7  ;;  %v6262_v17 = vld [vmem:[#allocation65_spill] sm:$0xff] }
 0x2c6   : > { %3328 = vmatprep.subr.mxu0 %v6253_v22  ;;  %3312 = vmatpush3.msra.mxu1 %v6254_v32  ;;  %v3010_v7 = vld [vmem:[%s5985_s5 + $0x80] sm:$0xff] }
 0x2c7   : > { %3329 = vmatpush3.msra.mxu0 %v6255_v25  ;;  %3313 = vmatprep.subr.mxu1 %v6256_v6  ;;  %v2263_v25 = vld [vmem:[%s5985_s5 + $0x20] sm:$0xff]  ;;  %v3009_v6 = vld [vmem:[%s5985_s5 + $0x78] sm:$0xff] }
 0x2c8   : > { %3330 = vmatprep.subr.mxu0 %v6257_v21  ;;  %3314 = vmatpush3.msra.mxu1 %v6258_v16  ;;  %v2262_v21 = vld [vmem:[%s5985_s5 + $0x18] sm:$0xff]  ;;  %v3008_v16 = vld [vmem:[%s5985_s5 + $0x70] sm:$0xff] }
 0x2c9   : > { %3331 = vmatpush3.msra.mxu0 %v6259_v18  ;;  %3315 = vmatprep.subr.mxu1 %v6260_v23  ;;  %v2261_v18 = vld [vmem:[%s5985_s5 + $0x10] sm:$0xff]  ;;  %v3007_v23 = vld [vmem:[%s5985_s5 + $0x68] sm:$0xff] }
 0x2ca   : > { %3332 = vmatprep.subr.mxu0 %v6261_v24  ;;  %3316 = vmatpush3.msra.mxu1 %v6262_v17  ;;  %v2260_v24 = vld [vmem:[%s5985_s5 + $0x8] sm:$0xff]  ;;  %v3006_v17 = vld [vmem:[%s5985_s5 + $0x60] sm:$0xff] }
 0x2cb   : > { %3333 = vmatpush3.msra.mxu0 %v6263_v26  ;;  %3317 = vmatprep.subr.mxu1 %v6264_v28  ;;  %v2259_v26 = vld [vmem:[%s5985_s5] sm:$0xff]  ;;  %v3005_v28 = vld [vmem:[%s5985_s5 + $0x58] sm:$0xff] }
 0x2cc   : > { %3334 = vmatprep.subr.mxu0 %v6265_v29  ;;  %3318 = vmatpush3.msra.mxu1 %v6266_v30  ;;  %v3004_v29 = vld [vmem:[%s5985_s5 + $0x50] sm:$0xff] }
 0x2cd   : > { %3335 = vmatpush3.msra.mxu0 %v6267_v33  ;;  %3319 = vmatprep.subr.mxu1 %v6268_v35 }
 0x2ce   : > { %3336 = vmatprep.subr.mxu0 %v5246_v48  ;;  %3320 = vmatpush3.msra.mxu1 %v6269_v36  ;;  %v6277_v48 = vld [vmem:[#allocation80_spill] sm:$0xff] }
 0x2cf   : > { %3337 = vmatpush3.msra.mxu0 %v6270_v37  ;;  %3321 = vmatprep.subr.mxu1 %v6271_v38 }
 0x2d0   : > { %3338 = vmatprep.subr.mxu0 %v6272_v40  ;;  %3322 = vmatpush3.msra.mxu1 %v6273_v44 }
 0x2d1   : > { %3339 = vmatpush3.msra.mxu0 %v6274_v49  ;;  %2103 = vmatmul.mubr.f32.vlgmr.msra.gmra.mxu1 %v5560_v31  ;;  %v6282_v31 = vld [vmem:[#allocation85_spill] sm:$0xff] }
 0x2d2   : > { %3340 = vmatprep.subr.mxu0 %v6275_v50  ;;  %3500 = vmatprep.subr.mxu1 %v6120_v2 }
 0x2d3   : > { %3341 = vmatpush3.msra.mxu0 %v6276_v51  ;;  %3501 = vmatpush3.msra.mxu1 %v6277_v48 }
 0x2d4   : > { %3342 = vmatprep.subr.mxu0 %v6278_v52  ;;  %3502 = vmatprep.subr.mxu1 %v6120_v2 }
 0x2d5   : > { %3343 = vmatpush3.msra.mxu0 %v6279_v53  ;;  %3503 = vmatpush3.msra.mxu1 %v6280_v54 }
 0x2d6   : > { %3344 = vmatprep.subr.mxu0 %v6281_v55  ;;  %3504 = vmatprep.subr.mxu1 %v6120_v2 }
 0x2d7   : > { %3345 = vmatpush3.msra.mxu0 %v6282_v31  ;;  %3505 = vmatpush3.msra.mxu1 %v6283_v57 }
 0x2d8   : > { %3346 = vmatprep.subr.mxu0 %v6284_v58  ;;  %3506 = vmatprep.subr.mxu1 %v6120_v2 }
 0x2d9   : > { %3347 = vmatpush3.msra.mxu0 %v6285_v59  ;;  %3507 = vmatpush3.msra.mxu1 %v6286_v60 }
 0x2da   : > { %3348 = vmatprep.subr.mxu0 %v6287_v61  ;;  %3508 = vmatprep.subr.mxu1 %v6120_v2 }
 0x2db   : > { %3349 = vmatpush3.msra.mxu0 %v6288_v62  ;;  %3509 = vmatpush3.msra.mxu1 %v6289_v63 }
 0x2dc   : > { %3350 = vmatprep.subr.mxu0 %v6290_v11  ;;  %3510 = vmatprep.subr.mxu1 %v6120_v2 }
 0x2dd   : > { %3351 = vmatpush3.msra.mxu0 %v6291_v12  ;;  %3511 = vmatpush3.msra.mxu1 %v6292_v13 }
 0x2de   : > { %3352 = vmatprep.subr.mxu0 %v6293_v20  ;;  %3512 = vmatprep.subr.mxu1 %v6120_v2 }
 0x2df   : > { %3353 = vmatpush3.msra.mxu0 %v6294_v27  ;;  %3513 = vmatpush3.msra.mxu1 %v6295_v9 }
 0x2e0   : > { %3354 = vmatprep.subr.mxu0 %v6296_v34  ;;  %3514 = vmatprep.subr.mxu1 %v6120_v2 }
 0x2e1   : > { %3355 = vmatpush3.msra.mxu0 %v5429_v14  ;;  %3515 = vmatpush3.msra.mxu1 %v5434_v56 }
 0x2e2   : > { %3356 = vmatprep.subr.mxu0 %v6297_v45  ;;  %3516 = vmatprep.subr.mxu1 %v6120_v2 }
 0x2e3   : > { %3357 = vmatpush3.msra.mxu0 %v6298_v8  ;;  %3517 = vmatpush3.msra.mxu1 %v5453_v15  ;;  %v3002_v8 = vld [vmem:[%s5984_s4] ss:$0 sm:$0xff] }
 0x2e4   : > { %2173 = vmatmul.mubr.f32.vlgmr.msra.gmra.mxu0 %v5575_v43  ;;  %3518 = vmatprep.subr.mxu1 %v6120_v2  ;;  %v2268_v43 = vld [vmem:[%s5985_s5 + $0x48] sm:$0xff] }
 0x2e5   : > { %3519 = vmatpush3.msra.mxu1 %v5464_v10  ;;  %3522 = vmatprep.mubr.msk.f32.mxu1 %vm3787_vm10, %v6120_v2 }
 0x2e6   : > { %3520 = vmatprep.subr.mxu1 %v6120_v2  ;;  %3525 = vmatprep.subr.mxu0 %v6120_v2 }
 0x2e7   : > { %3521 = vmatpush3.msra.mxu1 %v5482_v39  ;;  %3545 = vmatprep.mubr.msk.f32.mxu0 %vm3787_vm10, %v6120_v2  ;;  %v2267_v39 = vld [vmem:[%s5985_s5 + $0x40] sm:$0xff] }
 0x2e8   : > { %3523 = vmatmul.mubr.msk.f32.vlgmr.msra.gmra.mxu1 %vm1308_vm11, %v5496_v19  ;;  %3548 = vmatprep.subr.mxu1 %v6120_v2  ;;  %v3013_v19 = vld [vmem:[%s5985_s5 + $0x98] sm:$0xff] }
 0x2e9   : > { %3568 = vmatprep.mubr.msk.f32.mxu1 %vm3787_vm10, %v6120_v2  ;;  %3526 = vmatpush3.msra.mxu0 %v2268_v43 }
 0x2ea   : > { %3549 = vmatpush3.msra.mxu1 %v3013_v19  ;;  %3527 = vmatprep.subr.mxu0 %v6120_v2  ;;  %v3035_v19 = vld [vmem:[%s5985_s5 + $0x138] sm:$0xff] }
 0x2eb   : > { %3550 = vmatprep.subr.mxu1 %v6120_v2  ;;  %3528 = vmatpush3.msra.mxu0 %v2267_v39  ;;  %v3023_v39 = vld [vmem:[%s5985_s5 + $0xe0] sm:$0xff] }
 0x2ec   : > { %3551 = vmatpush3.msra.mxu1 %v3012_v46  ;;  %3529 = vmatprep.subr.mxu0 %v6120_v2  ;;  %v3022_v46 = vld [vmem:[%s5985_s5 + $0xd8] sm:$0xff] }
 0x2ed   : > { %3552 = vmatprep.subr.mxu1 %v6120_v2  ;;  %3530 = vmatpush3.msra.mxu0 %v2266_v42  ;;  %v3021_v42 = vld [vmem:[%s5985_s5 + $0xd0] sm:$0xff] }
 0x2ee   : > { %3531 = vmatprep.subr.mxu0 %v6120_v2  ;;  %3553 = vmatpush3.msra.mxu1 %v3011_v3  ;;  %v3019_v3 = vld [vmem:[%s5985_s5 + $0xc0] sm:$0xff] }
 0x2ef   : > { %3532 = vmatpush3.msra.mxu0 %v2265_v1  ;;  %3554 = vmatprep.subr.mxu1 %v6120_v2  ;;  %v3032_v1 = vld [vmem:[%s5985_s5 + $0x120] sm:$0xff] }
 0x2f0   : > { %3533 = vmatprep.subr.mxu0 %v6120_v2  ;;  %3555 = vmatpush3.msra.mxu1 %v3010_v7  ;;  %v3030_v7 = vld [vmem:[%s5985_s5 + $0x110] sm:$0xff] }
 0x2f1   : > { %3534 = vmatpush3.msra.mxu0 %v2264_v5  ;;  %3556 = vmatprep.subr.mxu1 %v6120_v2  ;;  %v3018_v5 = vld [vmem:[%s5985_s5 + $0xb8] sm:$0xff] }
 0x2f2   : > { %3535 = vmatprep.subr.mxu0 %v6120_v2  ;;  %3557 = vmatpush3.msra.mxu1 %v3009_v6  ;;  %v3028_v6 = vld [vmem:[%s5985_s5 + $0x100] sm:$0xff] }
 0x2f3   : > { %3536 = vmatpush3.msra.mxu0 %v2263_v25  ;;  %3558 = vmatprep.subr.mxu1 %v6120_v2  ;;  %v3016_v25 = vld [vmem:[%s5985_s5 + $0xa8] sm:$0xff] }
 0x2f4   : > { %3537 = vmatprep.subr.mxu0 %v6120_v2  ;;  %3559 = vmatpush3.msra.mxu1 %v3008_v16  ;;  %v3027_v16 = vld [vmem:[%s5985_s5 + $0xf8] sm:$0xff] }
 0x2f5   : > { %3538 = vmatpush3.msra.mxu0 %v2262_v21  ;;  %3560 = vmatprep.subr.mxu1 %v6120_v2  ;;  %v3015_v21 = vld [vmem:[%s5985_s5 + $0xa0] sm:$0xff] }
 0x2f6   : > { %3539 = vmatprep.subr.mxu0 %v6120_v2  ;;  %3561 = vmatpush3.msra.mxu1 %v3007_v23  ;;  %v3026_v23 = vld [vmem:[%s5985_s5 + $0xf0] sm:$0xff] }
 0x2f7   : > { %3540 = vmatpush3.msra.mxu0 %v2261_v18  ;;  %3562 = vmatprep.subr.mxu1 %v6120_v2 }
 0x2f8   : > { %3541 = vmatprep.subr.mxu0 %v6120_v2  ;;  %3563 = vmatpush3.msra.mxu1 %v3006_v17  ;;  %v453_v17 = vld [vmem:[%s5987_s7 + $0x30] sm:$0x3] }
 0x2f9   : > { %3542 = vmatpush3.msra.mxu0 %v2260_v24  ;;  %3564 = vmatprep.subr.mxu1 %v6120_v2 }
 0x2fa   : > { %3543 = vmatprep.subr.mxu0 %v6120_v2  ;;  %3565 = vmatpush3.msra.mxu1 %v3005_v28  ;;  %v451_v28 = vld [vmem:[%s5987_s7 + $0x20] sm:$0xff] }
 0x2fb   : > { %3544 = vmatpush3.msra.mxu0 %v2259_v26  ;;  %3566 = vmatprep.subr.mxu1 %v6120_v2  ;;  %v452_v26 = vld [vmem:[%s5987_s7 + $0x28] sm:$0xff] }
 0x2fc   : > { %3571 = vmatprep.subr.mxu0 %v6120_v2  ;;  %3567 = vmatpush3.msra.mxu1 %v3004_v29  ;;  %v450_v29 = vld [vmem:[%s5987_s7 + $0x18] sm:$0xff] }
 0x2fd   : > { %3594 = vmatprep.subr.mxu1 %v6120_v2 }
 0x310   : > { %v3077_v56 = vpop.f32.mrf.mxu0 }
 0x312   : > { %v3078_v10 = vpop.f32.mrf.mxu0 }
 0x313   : > { %v3079_v15 = vadd.f32 %v3078_v10, %v3077_v56 }
 0x314   : > { %v3112_v14 = vpop.f32.mrf.mxu1 }
 0x316   : > { %v3113_v41 = vpop.f32.mrf.mxu1 }
 0x317   : > { %v3114_v47 = vadd.f32 %v3113_v41, %v3112_v14  ;;  %v3024_v14 = vld [vmem:[%s5985_s5 + $0xe8] sm:$0xff]  ;;  %v3034_v41 = vld [vmem:[%s5985_s5 + $0x130] sm:$0xff] }
 0x319   : > { %v1448_v0 = vadd.f32 %v3114_v47, %v3079_v15  ;;  %v3033_v47 = vld [vmem:[%s5985_s5 + $0x128] sm:$0xff] }
 0x326   : > { %v1517_v4 = vpop.f32.mrf.mxu0 }
 0x327   : > { %v5736_v22 = vadd.f32 %v1517_v4, %v1448_v0  ;;  %v3020_v0 = vld [vmem:[%s5985_s5 + $0xc8] sm:$0xff]  ;;  %v3031_v4 = vld [vmem:[%s5985_s5 + $0x118] sm:$0xff] }
 0x328   : > { %v3449_v32 = vpop.f32.mrf.mxu0 }
 0x329   : > { %v3029_v32 = vld [vmem:[%s5985_s5 + $0x108] sm:$0xff] }
 0x335   : > { %v3159_v30 = vpop.f32.mrf.mxu1 }
 0x337   : > { %v3160_v33 = vpop.f32.mrf.mxu1 }
 0x338   : > { %v3161_v35 = vadd.f32 %v3160_v33, %v3159_v30  ;;  %v449_v30 = vld [vmem:[%s5987_s7 + $0x10] sm:$0xff]  ;;  %v448_v33 = vld [vmem:[%s5987_s7 + $0x8] sm:$0xff] }
 0x348   : > { %v3194_v36 = vpop.f32.mrf.mxu0 }
 0x34a   : > { %v3195_v37 = vpop.f32.mrf.mxu0 }
 0x34b   : > { %v3196_v38 = vadd.f32 %v3195_v37, %v3194_v36 }
 0x34d   : > { %v1734_v40 = vadd.f32 %v3196_v38, %v3161_v35  ;;  %v1803_v44 = vpop.f32.mrf.mxu1  ;;  %v447_v35 = vld [vmem:[%s5987_s7] sm:$0xff] }
 0x34f   : > { %v1804_v49 = vadd.f32 %v1803_v44, %v1734_v40  ;;  %v3474_v50 = vpop.f32.mrf.mxu1  ;;  %v445_v44 = vld [vmem:[%s5986_s6] sm:$0x1] }
 0x351   : > { %v1807_v51 = vmax.f32 %v5736_v22, %v1804_v49  ;;  %v3017_v22 = vld [vmem:[%s5985_s5 + $0xb0] sm:$0xff] }
 0x36a   : > { %v3241_v48 = vpop.f32.mrf.mxu0 }
 0x36c   : > { %v3242_v52 = vpop.f32.mrf.mxu0 }
 0x36d   : > { %v3243_v59 = vadd.f32 %v3242_v52, %v3241_v48 }
 0x36f   : > { %v3276_v55 = vpop.f32.mrf.mxu1 }
 0x371   : > { %v3277_v31 = vpop.f32.mrf.mxu1 }
 0x372   : > { %v3278_v58 = vadd.f32 %v3277_v31, %v3276_v55 }
 0x374   : > { %v1964_v62 = vadd.f32 %v3278_v58, %v3243_v59 }
 0x382   : > { %v2033_v53 = vpop.f32.mrf.mxu0 }
 0x383   : > { %v2034_v11 = vadd.f32 %v2033_v53, %v1964_v62 }
 0x384   : > { %v3499_v54 = vpop.f32.mrf.mxu0 }
 0x385   : > { %v2037_v34 = vmax.f32 %v1807_v51, %v2034_v11 }
 0x391   : > { %v3323_v57 = vpop.f32.mrf.mxu1 }
 0x393   : > { %v3324_v60 = vpop.f32.mrf.mxu1 }
 0x394   : > { %v3325_v12 = vadd.f32 %v3324_v60, %v3323_v57 }
 0x3a4   : > { %v3358_v61 = vpop.f32.mrf.mxu0 }
 0x3a6   : > { %v3359_v63 = vpop.f32.mrf.mxu0 }
 0x3a7   : > { %v3360_v13 = vadd.f32 %v3359_v63, %v3358_v61 }
 0x3a8   : > { %v2244_v20 = vpop.f32.mrf.mxu1 }
 0x3a9   : > { %v2175_v27 = vadd.f32 %v3360_v13, %v3325_v12 }
 0x3aa   : > { %v3524_v9 = vpop.f32.mrf.mxu1 }
 0x3ab   : > { %v2245_v45 = vadd.f32 %v2244_v20, %v2175_v27 }
 0x3ad   : > { %v2248_v56 = vmax.f32 %v2037_v34, %v2245_v45 }
 0x3af   : > { %v2255_v10 = vadd.f32 %v3002_v8, %v2248_v56 }
 0x3b1   : > { %v5792_v15 = vmax.f32 %v2255_v10, 0.0 }
 0x3b3   : > { %2258 = vst.msk [vmem:[%s442_s0] sm:$0xf] %vm2257_vm12, %v5792_v15  ;;  %3546 = vmatmul.mubr.msk.f32.vlgmr.msra.gmra.mxu0 %vm2269_vm13, %v5792_v15  ;;  %v2355_v43 = vrot.slane %v5792_v15, 1  ;;  %v2440_v18 = vrot.slane %v5792_v15, 2  ;;  %v2525_v24 = vrot.slane %v5792_v15, 3  ;;  %s3788_s0 = smov [#allocation2]  }
 0x3b4   : > { %3572 = vmatpush3.msra.mxu0 %v3024_v14  ;;  %3591 = vmatprep.mubr.msk.f32.mxu0 %vm3787_vm10, %v6120_v2  ;;  %s3691_s30 = sshll.u32 %s3788_s0, 4  ;;  %s3692_s30 = int_to_ptr.vmem [resolvable:$false] %s3691_s30 }
 0x3b5   : > { %3573 = vmatprep.subr.mxu0 %v6120_v2  ;;  %3569 = vmatmul.mubr.msk.f32.vlgmr.msra.gmra.mxu1 %vm2269_vm13, %v2355_v43  ;;  %s3693_s1 = scalar_lea.vmem %s3692_s30, 32  ;;  %p3694_p0 = scmp.lt.s32.totalorder %s2716_s19, %s3692_s30 }
 0x3b6   : > { %3574 = vmatpush3.msra.mxu0 %v3023_v39  ;;  %3595 = vmatpush3.msra.mxu1 %v3035_v19  ;;  %p3695_p1 = scmp.lt.s32.totalorder %s3693_s1, %s3687_s20 }
 0x3b7   : > { %3575 = vmatprep.subr.mxu0 %v6120_v2  ;;  %3596 = vmatprep.subr.mxu1 %v6120_v2 }
 0x3b8   : > { %3576 = vmatpush3.msra.mxu0 %v3022_v46  ;;  %3597 = vmatpush3.msra.mxu1 %v3034_v41  ;;  %p3696_p2 = por %p3695_p1, %p3694_p0 }
 0x3b9   : > { %3577 = vmatprep.subr.mxu0 %v6120_v2  ;;  %3598 = vmatprep.subr.mxu1 %v6120_v2 }
 0x3ba   : > { %3578 = vmatpush3.msra.mxu0 %v3021_v42  ;;  %3599 = vmatpush3.msra.mxu1 %v3033_v47  ;;  %p3697_p3 = pnand %p3696_p2, %p3690_p13 }
 0x3bb   : > { %3579 = vmatprep.subr.mxu0 %v6120_v2  ;;  %3600 = vmatprep.subr.mxu1 %v6120_v2 }
 0x3bc   : > { %3580 = vmatpush3.msra.mxu0 %v3020_v0  ;;  %3601 = vmatpush3.msra.mxu1 %v3032_v1 }
 0x3bd   : > { %3581 = vmatprep.subr.mxu0 %v6120_v2  ;;  %3602 = vmatprep.subr.mxu1 %v6120_v2 }
 0x3be   : > { %3582 = vmatpush3.msra.mxu0 %v3019_v3  ;;  %3603 = vmatpush3.msra.mxu1 %v3031_v4 }
 0x3bf   : > { %3583 = vmatprep.subr.mxu0 %v6120_v2  ;;  %3604 = vmatprep.subr.mxu1 %v6120_v2 }
 0x3c0   : > { %3584 = vmatpush3.msra.mxu0 %v3018_v5  ;;  %3605 = vmatpush3.msra.mxu1 %v3030_v7 }
 0x3c1   : > { %3585 = vmatprep.subr.mxu0 %v6120_v2  ;;  %3606 = vmatprep.subr.mxu1 %v6120_v2 }
 0x3c2   : > { %3586 = vmatpush3.msra.mxu0 %v3017_v22  ;;  %3607 = vmatpush3.msra.mxu1 %v3029_v32 }
 0x3c3   : > { %3587 = vmatprep.subr.mxu0 %v6120_v2  ;;  %3608 = vmatprep.subr.mxu1 %v6120_v2 }
 0x3c4   : > { %3588 = vmatpush3.msra.mxu0 %v3016_v25  ;;  %3609 = vmatpush3.msra.mxu1 %v3028_v6 }
 0x3c5   : > { %3589 = vmatprep.subr.mxu0 %v6120_v2  ;;  %3610 = vmatprep.subr.mxu1 %v6120_v2 }
 0x3c6   : > { %3590 = vmatpush3.msra.mxu0 %v3015_v21  ;;  %3611 = vmatpush3.msra.mxu1 %v3027_v16 }
 0x3c7   : > { %3592 = vmatmul.mubr.msk.f32.vlgmr.msra.gmra.mxu0 %vm2269_vm13, %v2440_v18  ;;  %3612 = vmatprep.subr.mxu1 %v6120_v2 }
 0x3c8   : > { %3613 = vmatpush3.msra.mxu1 %v3026_v23  ;;  %3614 = vmatprep.mubr.msk.f32.mxu1 %vm3787_vm10, %v6120_v2 }
 0x3c9   : > { %3615 = vmatmul.mubr.msk.f32.vlgmr.msra.gmra.mxu1 %vm2269_vm13, %v2525_v24  ;;  %3617 = vmatprep.subr.mxu0 %v6120_v2 }
 0x3ca   : > { %3631 = vmatprep.mubr.msk.f32.mxu0 %vm3787_vm10, %v6120_v2  ;;  %3618 = vmatpush3.msk.msra.mxu0 %vm2606_vm14, %v453_v17 }
 0x3cb   : > { %3619 = vmatprep.subr.mxu0 %v6120_v2 }
 0x3cc   : > { %3620 = vmatpush3.msra.mxu0 %v452_v26 }
 0x3cd   : > { %3621 = vmatprep.subr.mxu0 %v6120_v2 }
 0x3ce   : > { %3622 = vmatpush3.msra.mxu0 %v451_v28 }
 0x3cf   : > { %3623 = vmatprep.subr.mxu0 %v6120_v2 }
 0x3d0   : > { %3624 = vmatpush3.msra.mxu0 %v450_v29 }
 0x3d1   : > { %3625 = vmatprep.subr.mxu0 %v6120_v2 }
 0x3d2   : > { %3626 = vmatpush3.msra.mxu0 %v449_v30 }
 0x3d3   : > { %3627 = vmatprep.subr.mxu0 %v6120_v2 }
 0x3d4   : > { %3628 = vmatpush3.msra.mxu0 %v448_v33 }
 0x3d5   : > { %3629 = vmatprep.subr.mxu0 %v6120_v2 }
 0x3d6   : > { %3630 = vmatpush3.msra.mxu0 %v447_v35 }
 0x473   : > { %v2339_v36 = vpop.f32.mrf.mxu0 }
 0x474   : > { %v2343_v49 = vadd.f32 %v2339_v36, %v445_v44 }
 0x475   : > { %v3547_v37 = vpop.f32.mrf.mxu0  ;;  %v2424_v38 = vpop.f32.mrf.mxu1 }
 0x476   : > { %v2428_v50 = vadd.f32 %v2424_v38, %v2343_v49 }
 0x477   : > { %v3570_v40 = vpop.f32.mrf.mxu1 }
 0x487   : > { %v2509_v51 = vpop.f32.mrf.mxu0 }
 0x488   : > { %v2513_v48 = vadd.f32 %v2509_v51, %v2428_v50 }
 0x489   : > { %v3593_v2 = vpop.f32.mrf.mxu0  ;;  %v2594_v52 = vpop.f32.mrf.mxu1 }
 0x48a   : > { %v2598_v53 = vadd.f32 %v2594_v52, %v2513_v48 }
 0x48b   : > { %v3616_v54 = vpop.f32.mrf.mxu1 }
 0x48c   : > { %v2599_v55 = vmax.f32 %v2598_v53, 0.0 }
 0x48e   : > { %3632 = vmatmul.mubr.msk.f32.vlgmr.msra.gmra.mxu0 %vm2602_vm15, %v2599_v55  ;;  %2601 = vst.msk [vmem:[%s422_s29] sm:$0x1] %vm2600_vm0, %v2599_v55 }
 0x48f   : > { %3700 = shalt.err (!%p3697_p3)
}
 0x490   : > { %s3701_s2 = scalar_lea.hbm %s2713_s28, 16  ;;  %s3705_s18 = scalar_lea.hbm %s5991_s11, 32 }
 0x491   : > { %p3702_p4 = scmp.ne.s32.totalorder %s2713_s28, %s3701_s2  ;;  %p3706_p9 = scmp.lt.s32.totalorder %s2713_s28, %s5991_s11 }
 0x492   : > { %p3707_p10 = scmp.lt.s32.totalorder %s3705_s18, %s3701_s2 }
 0x493   : > { %p3703_p7 = pnand %p3702_p4, %p3893_p5 }
 0x494   : > { %p3708_p11 = por %p3707_p10, %p3706_p9 }
 0x495   : > { %p3704_p8 = pneg %p3703_p7 }
 0x497   : > { %p3709_p12 = pnand %p3708_p11, %p3704_p8 }
 0x499   : > { %3712 = shalt.err (!%p3709_p12)
}
 0x49a   : > { %3634 = dma.vmem_to_hbm [thread:$0]  (%p3893_p5), %s2716_s19, 16, %s2713_s28, %s2693_s26   ;;  %v446_v31 = vld [vmem:[%s5988_s8] sm:$0x1]  ;;  %vm2681_vm1 = vcmask 73728  }
 0x49b   : > { %s428_s0 = scalar_lea.vmem [#allocation4], %s5919_s15  ;;  %s6299_s2 = sshll.u32 %s3876_s25, 4 }
 0x49c   : > { %s2728_s30 = sshll.u32 %s428_s0, 4  ;;  %s2726_s29 = scalar_lea.hbm %s5992_s12, %s6299_s2  ;;  %s2729_s30 = int_to_ptr.vmem [resolvable:$true] %s2728_s30 }
 0x49d   : > { %s2697_s17 = scalar_lea.sflag [#allocation5], %s5919_s15  ;;  %s3713_s28 = scalar_lea.vmem %s2729_s30, 16 }
 0x49e   : > { %p3714_p13 = scmp.ne.s32.totalorder %s2729_s30, %s3713_s28  ;;  %s3789_s19 = smov [#allocation4]  }
 0x49f   : > { %s3717_s26 = sshll.u32 %s3789_s19, 4  ;;  %s3718_s26 = int_to_ptr.vmem [resolvable:$false] %s3717_s26 }
 0x4a0   : > { %p3715_p0 = pnand %p3714_p13, %p3893_p5  ;;  %s3719_s18 = scalar_lea.vmem %s3718_s26, 32 }
 0x4a1   : > { %p3720_p2 = scmp.lt.s32.totalorder %s2729_s30, %s3718_s26  ;;  %p3721_p3 = scmp.lt.s32.totalorder %s3719_s18, %s3713_s28 }
 0x4a2   : > { %p3716_p1 = pneg %p3715_p0 }
 0x4a3   : > { %p3722_p4 = por %p3721_p3, %p3720_p2 }
 0x4a5   : > { %p3723_p7 = pnand %p3722_p4, %p3716_p1 }
 0x54e   : > { %v2676_v57 = vpop.f32.mrf.mxu0 }
 0x54f   : > { %v2677_v58 = vadd.f32 %v2676_v57, %v446_v31 }
 0x550   : > { %v3633_v59 = vpop.f32.mrf.mxu0 }
 0x551   : > { %v2680_v60 = vmax.f32 %v2677_v58, 0.0 }
 0x553   : > { %2682 = vst.msk [vmem:[%s428_s0] sm:$0x1] %vm2681_vm1, %v2680_v60 }
 0x554   : > { %3726 = shalt.err (!%p3723_p7)
}
 0x555   : > { %s3727_s25 = scalar_lea.hbm %s2726_s29, 16  ;;  %s3731_s20 = scalar_lea.hbm %s5992_s12, 32 }
 0x556   : > { %p3728_p8 = scmp.ne.s32.totalorder %s2726_s29, %s3727_s25  ;;  %p3732_p11 = scmp.lt.s32.totalorder %s2726_s29, %s5992_s12 }
 0x557   : > { %p3733_p12 = scmp.lt.s32.totalorder %s3731_s20, %s3727_s25 }
 0x558   : > { %p3729_p9 = pnand %p3728_p8, %p3893_p5 }
 0x559   : > { %p3734_p13 = por %p3733_p12, %p3732_p11 }
 0x55a   : > { %p3730_p10 = pneg %p3729_p9 }
 0x55c   : > { %p3735_p0 = pnand %p3734_p13, %p3730_p10 }
 0x55e   : > { %3738 = shalt.err (!%p3735_p0)
}
 0x55f   : > { %3635 = dma.vmem_to_hbm [thread:$0]  (%p3893_p5), %s2729_s30, 16, %s2726_s29, %s2697_s17  }
 0x560 PF: > { %p3645_p1 = scmp.ge.s32.totalorder %s3777_s24, 2  ;;  %s2755_s3 = sand.u32 1, %s3765_s21  }
 0x561   : > { %s2756_s16 = scalar_lea.sflag [#allocation3], %s2755_s3 }
 0x562   : > { %p3639_p2 = pnand %p3645_p1, %p3897_p6 }
 0x564   : > { %p3640_p3 = pneg %p3639_p2 }
 0x566   : > { %3756 = dma.done.wait (%p3640_p3), %s2756_s16, 16  }
 0x567   : > { %3758 = vsyncadd (%p3640_p3), %s2756_s16, 4294967280  ;;  %s2764_s28 = scalar_lea.sflag [#allocation5], %s2755_s3 }
 0x568   : > { %3760 = dma.done.wait (%p3640_p3), %s2764_s28, 16  }
 0x569   : > { %3762 = vsyncadd (%p3640_p3), %s2764_s28, 4294967280  ;;  %s6300_s13 = sld [smem:[#allocation8_spill]]  ;;  %p26_p5 = scmp.ge.s32.totalorder %s3880_s27, 4  }
 0x56a   : > { %s6301_s21 = smov %s3769_s22  ;;  %s6302_s22 = smov %s3773_s23 }
 0x56b   : > { %s6304_s24 = smov %s3880_s27  ;;  %28 = sbr.rel (!%p26_p5) target bundleno = 10 (0xa), region = 138 }
 0x56f   : > { %s6303_s23 = smov %s6300_s13 }
 0x570   :  { %2768 = vsyncpa [#allocation3], 1 }
 0x571   :  { %2770 = vsyncpa [#allocation3 + $0x1], 1 }
 0x572   :  { %2771 = vsyncpa [#allocation5], 1 }
 0x573   :  { %2773 = vsyncpa [#allocation5 + $0x1], 1 }

</bundles_post_ra>
